<compile_context>
chip_gen: v5e
topology: v5e:2x2
jax: 0.10.0
libtpu: 0.0.40
codegen_flags: <defaults>
</compile_context>

<pallas_src>
import functools

import jax
import jax.numpy as jnp
from jax import lax
from jax.experimental import pallas as pl
from jax.experimental.pallas import tpu as pltpu


_SQRT_2_OVER_PI = 0.7978845608028654


def _gelu_tanh(x):
    # TODO(synk): torch.nn.GELU() defaults to the exact erf GELU; the tanh approximation is used
    # here (and mirrored in the reference) to avoid relying on an erf lowering inside Mosaic
    # (max ~3e-3 pointwise difference).
    return 0.5 * x * (1.0 + jnp.tanh(_SQRT_2_OVER_PI * (x + 0.044715 * x * x * x)))


def _layer_norm(y, gamma, beta, eps):
    mean = jnp.mean(y, axis=-1, keepdims=True)
    var = jnp.mean((y - mean) ** 2, axis=-1, keepdims=True)
    return (y - mean) * lax.rsqrt(var + eps) * gamma + beta


def _bert_layer_kernel(x_ref, amask_ref,
                       wqkv_ref, bqkv_ref, wo_ref,
                       w1_ref, b1_ref, w2_ref, vec_ref,
                       o_ref, attn_sc, *, num_heads, ln_eps):
    f32 = jnp.float32
    x = x_ref[0]                      # (T, D)  f32
    amask = amask_ref[0]              # (1, T)  f32 additive mask: 0 (real) / -1e30 (pad)
    T, D = x.shape
    hd = D // num_heads
    scale = 1.0 / float(hd) ** 0.5

    # ---- fused QKV projection: one wide MXU matmul, f32 accumulation ----
    qkv = jnp.dot(x, wqkv_ref[...], preferred_element_type=f32) + bqkv_ref[...]
    q = qkv[:, 0 * D:1 * D] * scale   # fold 1/sqrt(hd) into q once (torch MHA scales q)
    k = qkv[:, 1 * D:2 * D]
    v = qkv[:, 2 * D:3 * D]

    # ---- multi-head attention: heads written into VMEM scratch (no concat) ----
    for h in range(num_heads):        # small static loop, unrolled at trace time
        sl = slice(h * hd, (h + 1) * hd)
        s = lax.dot_general(q[:, sl], k[:, sl],
                            (((1,), (1,)), ((), ())),            # contract last dims: q @ k^T
                            preferred_element_type=f32)          # (T, T)
        s = s + amask                                            # mask padded key columns
        s = s - jnp.max(s, axis=-1, keepdims=True)
        p = jnp.exp(s)
        p = p / jnp.sum(p, axis=-1, keepdims=True)               # exact softmax normalization
        attn_sc[:, sl] = jnp.dot(p, v[:, sl], preferred_element_type=f32)

    # ---- output projection + dropout(identity) + residual + LayerNorm ----
    out = jnp.dot(attn_sc[...], wo_ref[...], preferred_element_type=f32) + vec_ref[0:1, :]
    h1 = _layer_norm(out + x, vec_ref[1:2, :], vec_ref[2:3, :], ln_eps)

    # ---- feed-forward (D -> 4D -> D) + dropout(identity) + residual + LayerNorm ----
    f = jnp.dot(h1, w1_ref[...], preferred_element_type=f32) + b1_ref[...]
    g = _gelu_tanh(f)
    out2 = jnp.dot(g, w2_ref[...], preferred_element_type=f32) + vec_ref[3:4, :]
    o_ref[0] = _layer_norm(out2 + h1, vec_ref[4:5, :], vec_ref[5:6, :], ln_eps)


def _prep_layer(p):
    """Pre-fuse / pre-transpose a layer's weights (PyTorch Linear stores W as (out, in))."""
    d = p["wq"].shape[0]
    wqkv = jnp.concatenate([p["wq"].T, p["wk"].T, p["wv"].T], axis=1)              # (D, 3D)
    bqkv = jnp.concatenate([p["bq"], p["bk"], p["bv"]]).reshape(1, 3 * d)
    wo = p["wo"].T                                                                  # (D, D)
    w1 = p["w1"].T                                                                  # (D, 4D)
    b1 = p["b1"].reshape(1, 4 * d)
    w2 = p["w2"].T                                                                  # (4D, D)
    zeros = jnp.zeros((d,), jnp.float32)
    vecs = jnp.stack([p["bo"], p["gamma1"], p["beta1"],
                      p["b2"], p["gamma2"], p["beta2"], zeros, zeros], axis=0)       # (8, D)
    return wqkv, bqkv, wo, w1, b1, w2, vecs


def bert_encoder(x, padding_mask, layers, num_heads, ln_eps=1e-5):
    B, T, D = x.shape
    # additive key mask computed once for all layers / heads (1 = real, 0 = pad)
    amask = jnp.where(padding_mask > 0.5, 0.0, -1e30).astype(jnp.float32).reshape(B, 1, T)

    kernel = functools.partial(_bert_layer_kernel, num_heads=num_heads, ln_eps=ln_eps)
    full2d = lambda b: (0, 0)
    layer_call = pl.pallas_call(
        kernel,
        out_shape=jax.ShapeDtypeStruct((B, T, D), jnp.float32),
        grid=(B,),
        in_specs=[
            pl.BlockSpec((1, T, D), lambda b: (b, 0, 0)),      # x
            pl.BlockSpec((1, 1, T), lambda b: (b, 0, 0)),      # additive padding mask
            pl.BlockSpec((D, 3 * D), full2d),                  # fused Wqkv^T
            pl.BlockSpec((1, 3 * D), full2d),                  # fused qkv bias
            pl.BlockSpec((D, D), full2d),                      # Wo^T
            pl.BlockSpec((D, 4 * D), full2d),                  # W1^T
            pl.BlockSpec((1, 4 * D), full2d),                  # b1
            pl.BlockSpec((4 * D, D), full2d),                  # W2^T
            pl.BlockSpec((8, D), full2d),                      # packed [bo,g1,b1,b2,g2,b2,0,0]
        ],
        out_specs=pl.BlockSpec((1, T, D), lambda b: (b, 0, 0)),
        scratch_shapes=[pltpu.VMEM((T, D), jnp.float32)],      # per-head attention outputs
        compiler_params=pltpu.CompilerParams(
            dimension_semantics=("parallel",),
            vmem_limit_bytes=32 * 1024 * 1024),
    )
    for lp in layers:
        x = layer_call(x, amask, *_prep_layer(lp))
    return x


def _reference(x, padding_mask, layers, num_heads, ln_eps=1e-5):
    """Pure-JAX replica of the PyTorch forward (eval mode), full f32 like the kernel."""
    f32 = jnp.float32
    B, T, D = x.shape
    hd = D // num_heads
    scale = 1.0 / float(hd) ** 0.5
    amask = jnp.where(padding_mask > 0.5, 0.0, -1e30)[:, None, None, :]   # (B,1,1,T)

    def ln(y, g, b):
        m = jnp.mean(y, -1, keepdims=True)
        v = jnp.mean((y - m) ** 2, -1, keepdims=True)
        return (y - m) * lax.rsqrt(v + ln_eps) * g + b

    def split(a):   # (B,T,D) -> (B,H,T,hd)
        return a.reshape(B, T, num_heads, hd).transpose(0, 2, 1, 3)

    for p in layers:
        q = jnp.dot(x, p["wq"].T, preferred_element_type=f32) + p["bq"]
        k = jnp.dot(x, p["wk"].T, preferred_element_type=f32) + p["bk"]
        v = jnp.dot(x, p["wv"].T, preferred_element_type=f32) + p["bv"]
        q = q * scale
        qh, kh, vh = split(q), split(k), split(v)
        s = jnp.einsum("bhqd,bhkd->bhqk", qh, kh, preferred_element_type=f32) + amask
        s = s - jnp.max(s, axis=-1, keepdims=True)
        pr = jnp.exp(s)
        pr = pr / jnp.sum(pr, axis=-1, keepdims=True)
        o = jnp.einsum("bhqk,bhkd->bhqd", pr, vh, preferred_element_type=f32)
        o = o.transpose(0, 2, 1, 3).reshape(B, T, D)
        o = jnp.dot(o, p["wo"].T, preferred_element_type=f32) + p["bo"]
        h1 = ln(o + x, p["gamma1"], p["beta1"])
        f = jnp.dot(h1, p["w1"].T, preferred_element_type=f32) + p["b1"]
        g = _gelu_tanh(f)
        o2 = jnp.dot(g, p["w2"].T, preferred_element_type=f32) + p["b2"]
        x = ln(o2 + h1, p["gamma2"], p["beta2"])
    return x


def _init_layer(key, d):
    ks = jax.random.split(key, 16)
    s = 1.0 / jnp.sqrt(jnp.float32(d))
    s4 = 1.0 / jnp.sqrt(jnp.float32(4 * d))
    n = lambda k, shape, sc: sc * jax.random.normal(k, shape, jnp.float32)
    return {
        "wq": n(ks[0], (d, d), s), "wk": n(ks[1], (d, d), s), "wv": n(ks[2], (d, d), s),
        "bq": n(ks[3], (d,), 0.02), "bk": n(ks[4], (d,), 0.02), "bv": n(ks[5], (d,), 0.02),
        "wo": n(ks[6], (d, d), s), "bo": n(ks[7], (d,), 0.02),
        "gamma1": 1.0 + n(ks[8], (d,), 0.1), "beta1": n(ks[9], (d,), 0.1),
        "w1": n(ks[10], (4 * d, d), s), "b1": n(ks[11], (4 * d,), 0.02),
        "w2": n(ks[12], (d, 4 * d), s4), "b2": n(ks[13], (d,), 0.02),
        "gamma2": 1.0 + n(ks[14], (d,), 0.1), "beta2": n(ks[15], (d,), 0.1),
    }


if __name__ == "__main__":
    B, T, D, H, L = 2, 8, 32, 4, 2     # batch, seq, embedding_dim, num_heads, num_layers (Tmax=16)
    key = jax.random.PRNGKey(0)
    kx, kp = jax.random.split(key)
    layers = [_init_layer(k, D) for k in jax.random.split(kp, L)]
    x = jax.random.normal(kx, (B, T, D), jnp.float32)
    padding_mask = jnp.array([[1, 1, 1, 1, 1, 1, 1, 1],
                              [1, 1, 1, 1, 1, 0, 0, 0]], jnp.float32)   # 1 = real, 0 = pad

    encoder = jax.jit(functools.partial(bert_encoder, num_heads=H))
    out = jax.block_until_ready(encoder(x, padding_mask, layers))

    ref = _reference(x, padding_mask, layers, H)
    assert out.shape == (B, T, D)
    err = float(jnp.max(jnp.abs(out - ref)))
    # Tolerance accounts for TPU MXU reduced-precision f32 matmul defaults differing between the
    # Mosaic kernel and the XLA reference; in practice the agreement is far tighter.
    assert jnp.allclose(out, ref, atol=2e-2, rtol=2e-2), f"max abs diff {err}"
    print("KERNEL_OK")
</pallas_src>

<mosaic_0001>
module attributes {stable_mosaic.version = 11 : i64} {
  func.func @_bert_layer_kernel(%arg0: i32, %arg1: memref<1x8x32xf32, #tpu.memory_space<vmem>>, %arg2: memref<1x1x8xf32, #tpu.memory_space<vmem>>, %arg3: memref<32x96xf32, #tpu.memory_space<vmem>>, %arg4: memref<1x96xf32, #tpu.memory_space<vmem>>, %arg5: memref<32x32xf32, #tpu.memory_space<vmem>>, %arg6: memref<32x128xf32, #tpu.memory_space<vmem>>, %arg7: memref<1x128xf32, #tpu.memory_space<vmem>>, %arg8: memref<128x32xf32, #tpu.memory_space<vmem>>, %arg9: memref<8x32xf32, #tpu.memory_space<vmem>>, %arg10: memref<1x8x32xf32, #tpu.memory_space<vmem>>, %arg11: memref<8x32xf32, #tpu.memory_space<vmem>>) attributes {dimension_semantics = [#tpu.dimension_semantics<parallel>], iteration_bounds = array<i64: 2>, scalar_prefetch = 0 : i64, scratch_operands = 1 : i64, tpu.core_type = #tpu.core_type<tc>, window_params = [{transform_indices = @transform_0, window_bounds = array<i64: 1, 8, 32>}, {transform_indices = @transform_1, window_bounds = array<i64: 1, 1, 8>}, {pipeline_mode = #tpu.pipeline_mode<synchronous>, transform_indices = @transform_2, window_bounds = array<i64: 32, 96>}, {pipeline_mode = #tpu.pipeline_mode<synchronous>, transform_indices = @transform_3, window_bounds = array<i64: 1, 96>}, {pipeline_mode = #tpu.pipeline_mode<synchronous>, transform_indices = @transform_4, window_bounds = array<i64: 32, 32>}, {pipeline_mode = #tpu.pipeline_mode<synchronous>, transform_indices = @transform_5, window_bounds = array<i64: 32, 128>}, {pipeline_mode = #tpu.pipeline_mode<synchronous>, transform_indices = @transform_6, window_bounds = array<i64: 1, 128>}, {pipeline_mode = #tpu.pipeline_mode<synchronous>, transform_indices = @transform_7, window_bounds = array<i64: 128, 32>}, {pipeline_mode = #tpu.pipeline_mode<synchronous>, transform_indices = @transform_8, window_bounds = array<i64: 8, 32>}, {transform_indices = @transform_9, window_bounds = array<i64: 1, 8, 32>}]} {
    %c0 = arith.constant 0 : index
    %c0_0 = arith.constant 0 : index
    %c0_1 = arith.constant 0 : index
    %0 = vector.load %arg1[%c0, %c0_0, %c0_1] : memref<1x8x32xf32, #tpu.memory_space<vmem>>, vector<1x8x32xf32>
    %1 = vector.shape_cast %0 : vector<1x8x32xf32> to vector<8x32xf32>
    %c0_2 = arith.constant 0 : index
    %c0_3 = arith.constant 0 : index
    %c0_4 = arith.constant 0 : index
    %2 = vector.load %arg2[%c0_2, %c0_3, %c0_4] : memref<1x1x8xf32, #tpu.memory_space<vmem>>, vector<1x1x8xf32>
    %3 = vector.shape_cast %2 : vector<1x1x8xf32> to vector<1x8xf32>
    %c0_5 = arith.constant 0 : index
    %c0_6 = arith.constant 0 : index
    %4 = vector.load %arg3[%c0_5, %c0_6] : memref<32x96xf32, #tpu.memory_space<vmem>>, vector<32x96xf32>
    %cst = arith.constant dense<0.000000e+00> : vector<8x96xf32>
    %5 = tpu.matmul %1, %4, %cst {dimension_numbers = #tpu.dot_dimension_numbers<[1], [0], [0], [1], [0, 0, 1, 1], [], []>} : vector<8x32xf32>, vector<32x96xf32>, vector<8x96xf32> -> vector<8x96xf32>
    %c0_7 = arith.constant 0 : index
    %c0_8 = arith.constant 0 : index
    %6 = vector.load %arg4[%c0_7, %c0_8] : memref<1x96xf32, #tpu.memory_space<vmem>>, vector<1x96xf32>
    %7 = vector.broadcast %6 : vector<1x96xf32> to vector<8x96xf32>
    %8 = arith.addf %5, %7 : vector<8x96xf32>
    %9 = vector.extract_strided_slice %8 {offsets = [0, 0], sizes = [8, 32], strides = [1, 1]} : vector<8x96xf32> to vector<8x32xf32>
    %cst_9 = arith.constant 0.353553385 : f32
    %10 = vector.broadcast %cst_9 : f32 to vector<8x32xf32>
    %11 = arith.mulf %9, %10 : vector<8x32xf32>
    %12 = vector.extract_strided_slice %8 {offsets = [0, 32], sizes = [8, 32], strides = [1, 1]} : vector<8x96xf32> to vector<8x32xf32>
    %13 = vector.extract_strided_slice %8 {offsets = [0, 64], sizes = [8, 32], strides = [1, 1]} : vector<8x96xf32> to vector<8x32xf32>
    %14 = vector.extract_strided_slice %11 {offsets = [0, 0], sizes = [8, 8], strides = [1, 1]} : vector<8x32xf32> to vector<8x8xf32>
    %15 = vector.extract_strided_slice %12 {offsets = [0, 0], sizes = [8, 8], strides = [1, 1]} : vector<8x32xf32> to vector<8x8xf32>
    %cst_10 = arith.constant dense<0.000000e+00> : vector<8x8xf32>
    %16 = tpu.matmul %14, %15, %cst_10 {dimension_numbers = #tpu.dot_dimension_numbers<[1], [1], [0], [0], [0, 0, 1, 0], [], []>} : vector<8x8xf32>, vector<8x8xf32>, vector<8x8xf32> -> vector<8x8xf32>
    %17 = vector.broadcast %3 : vector<1x8xf32> to vector<8x8xf32>
    %18 = arith.addf %16, %17 : vector<8x8xf32>
    %cst_11 = arith.constant dense<0xFF800000> : vector<8xf32>
    %19 = vector.multi_reduction <maximumf>, %18, %cst_11 [1] : vector<8x8xf32> to vector<8xf32>
    %20 = vector.shape_cast %19 : vector<8xf32> to vector<8x1xf32>
    %21 = vector.broadcast %20 : vector<8x1xf32> to vector<8x8xf32>
    %22 = arith.subf %18, %21 : vector<8x8xf32>
    %23 = math.exp %22 : vector<8x8xf32>
    %cst_12 = arith.constant dense<0.000000e+00> : vector<8xf32>
    %24 = vector.multi_reduction <add>, %23, %cst_12 [1] : vector<8x8xf32> to vector<8xf32>
    %25 = vector.shape_cast %24 : vector<8xf32> to vector<8x1xf32>
    %26 = vector.broadcast %25 : vector<8x1xf32> to vector<8x8xf32>
    %27 = arith.divf %23, %26 : vector<8x8xf32>
    %28 = vector.extract_strided_slice %13 {offsets = [0, 0], sizes = [8, 8], strides = [1, 1]} : vector<8x32xf32> to vector<8x8xf32>
    %cst_13 = arith.constant dense<0.000000e+00> : vector<8x8xf32>
    %29 = tpu.matmul %27, %28, %cst_13 {dimension_numbers = #tpu.dot_dimension_numbers<[1], [0], [0], [1], [0, 0, 1, 1], [], []>} : vector<8x8xf32>, vector<8x8xf32>, vector<8x8xf32> -> vector<8x8xf32>
    %c0_14 = arith.constant 0 : index
    %c0_15 = arith.constant 0 : index
    %30 = vector.load %arg11[%c0_14, %c0_15] : memref<8x32xf32, #tpu.memory_space<vmem>>, vector<8x8xf32>
    tpu.vector_store %arg11[%c0_14, %c0_15], %29 {strides = array<i32>} : memref<8x32xf32, #tpu.memory_space<vmem>>, vector<8x8xf32>,
    %31 = vector.extract_strided_slice %11 {offsets = [0, 8], sizes = [8, 8], strides = [1, 1]} : vector<8x32xf32> to vector<8x8xf32>
    %32 = vector.extract_strided_slice %12 {offsets = [0, 8], sizes = [8, 8], strides = [1, 1]} : vector<8x32xf32> to vector<8x8xf32>
    %cst_16 = arith.constant dense<0.000000e+00> : vector<8x8xf32>
    %33 = tpu.matmul %31, %32, %cst_16 {dimension_numbers = #tpu.dot_dimension_numbers<[1], [1], [0], [0], [0, 0, 1, 0], [], []>} : vector<8x8xf32>, vector<8x8xf32>, vector<8x8xf32> -> vector<8x8xf32>
    %34 = vector.broadcast %3 : vector<1x8xf32> to vector<8x8xf32>
    %35 = arith.addf %33, %34 : vector<8x8xf32>
    %cst_17 = arith.constant dense<0xFF800000> : vector<8xf32>
    %36 = vector.multi_reduction <maximumf>, %35, %cst_17 [1] : vector<8x8xf32> to vector<8xf32>
    %37 = vector.shape_cast %36 : vector<8xf32> to vector<8x1xf32>
    %38 = vector.broadcast %37 : vector<8x1xf32> to vector<8x8xf32>
    %39 = arith.subf %35, %38 : vector<8x8xf32>
    %40 = math.exp %39 : vector<8x8xf32>
    %cst_18 = arith.constant dense<0.000000e+00> : vector<8xf32>
    %41 = vector.multi_reduction <add>, %40, %cst_18 [1] : vector<8x8xf32> to vector<8xf32>
    %42 = vector.shape_cast %41 : vector<8xf32> to vector<8x1xf32>
    %43 = vector.broadcast %42 : vector<8x1xf32> to vector<8x8xf32>
    %44 = arith.divf %40, %43 : vector<8x8xf32>
    %45 = vector.extract_strided_slice %13 {offsets = [0, 8], sizes = [8, 8], strides = [1, 1]} : vector<8x32xf32> to vector<8x8xf32>
    %cst_19 = arith.constant dense<0.000000e+00> : vector<8x8xf32>
    %46 = tpu.matmul %44, %45, %cst_19 {dimension_numbers = #tpu.dot_dimension_numbers<[1], [0], [0], [1], [0, 0, 1, 1], [], []>} : vector<8x8xf32>, vector<8x8xf32>, vector<8x8xf32> -> vector<8x8xf32>
    %c0_20 = arith.constant 0 : index
    %c8 = arith.constant 8 : index
    %47 = vector.load %arg11[%c0_20, %c8] : memref<8x32xf32, #tpu.memory_space<vmem>>, vector<8x8xf32>
    tpu.vector_store %arg11[%c0_20, %c8], %46 {strides = array<i32>} : memref<8x32xf32, #tpu.memory_space<vmem>>, vector<8x8xf32>,
    %48 = vector.extract_strided_slice %11 {offsets = [0, 16], sizes = [8, 8], strides = [1, 1]} : vector<8x32xf32> to vector<8x8xf32>
    %49 = vector.extract_strided_slice %12 {offsets = [0, 16], sizes = [8, 8], strides = [1, 1]} : vector<8x32xf32> to vector<8x8xf32>
    %cst_21 = arith.constant dense<0.000000e+00> : vector<8x8xf32>
    %50 = tpu.matmul %48, %49, %cst_21 {dimension_numbers = #tpu.dot_dimension_numbers<[1], [1], [0], [0], [0, 0, 1, 0], [], []>} : vector<8x8xf32>, vector<8x8xf32>, vector<8x8xf32> -> vector<8x8xf32>
    %51 = vector.broadcast %3 : vector<1x8xf32> to vector<8x8xf32>
    %52 = arith.addf %50, %51 : vector<8x8xf32>
    %cst_22 = arith.constant dense<0xFF800000> : vector<8xf32>
    %53 = vector.multi_reduction <maximumf>, %52, %cst_22 [1] : vector<8x8xf32> to vector<8xf32>
    %54 = vector.shape_cast %53 : vector<8xf32> to vector<8x1xf32>
    %55 = vector.broadcast %54 : vector<8x1xf32> to vector<8x8xf32>
    %56 = arith.subf %52, %55 : vector<8x8xf32>
    %57 = math.exp %56 : vector<8x8xf32>
    %cst_23 = arith.constant dense<0.000000e+00> : vector<8xf32>
    %58 = vector.multi_reduction <add>, %57, %cst_23 [1] : vector<8x8xf32> to vector<8xf32>
    %59 = vector.shape_cast %58 : vector<8xf32> to vector<8x1xf32>
    %60 = vector.broadcast %59 : vector<8x1xf32> to vector<8x8xf32>
    %61 = arith.divf %57, %60 : vector<8x8xf32>
    %62 = vector.extract_strided_slice %13 {offsets = [0, 16], sizes = [8, 8], strides = [1, 1]} : vector<8x32xf32> to vector<8x8xf32>
    %cst_24 = arith.constant dense<0.000000e+00> : vector<8x8xf32>
    %63 = tpu.matmul %61, %62, %cst_24 {dimension_numbers = #tpu.dot_dimension_numbers<[1], [0], [0], [1], [0, 0, 1, 1], [], []>} : vector<8x8xf32>, vector<8x8xf32>, vector<8x8xf32> -> vector<8x8xf32>
    %c0_25 = arith.constant 0 : index
    %c16 = arith.constant 16 : index
    %64 = vector.load %arg11[%c0_25, %c16] : memref<8x32xf32, #tpu.memory_space<vmem>>, vector<8x8xf32>
    tpu.vector_store %arg11[%c0_25, %c16], %63 {strides = array<i32>} : memref<8x32xf32, #tpu.memory_space<vmem>>, vector<8x8xf32>,
    %65 = vector.extract_strided_slice %11 {offsets = [0, 24], sizes = [8, 8], strides = [1, 1]} : vector<8x32xf32> to vector<8x8xf32>
    %66 = vector.extract_strided_slice %12 {offsets = [0, 24], sizes = [8, 8], strides = [1, 1]} : vector<8x32xf32> to vector<8x8xf32>
    %cst_26 = arith.constant dense<0.000000e+00> : vector<8x8xf32>
    %67 = tpu.matmul %65, %66, %cst_26 {dimension_numbers = #tpu.dot_dimension_numbers<[1], [1], [0], [0], [0, 0, 1, 0], [], []>} : vector<8x8xf32>, vector<8x8xf32>, vector<8x8xf32> -> vector<8x8xf32>
    %68 = vector.broadcast %3 : vector<1x8xf32> to vector<8x8xf32>
    %69 = arith.addf %67, %68 : vector<8x8xf32>
    %cst_27 = arith.constant dense<0xFF800000> : vector<8xf32>
    %70 = vector.multi_reduction <maximumf>, %69, %cst_27 [1] : vector<8x8xf32> to vector<8xf32>
    %71 = vector.shape_cast %70 : vector<8xf32> to vector<8x1xf32>
    %72 = vector.broadcast %71 : vector<8x1xf32> to vector<8x8xf32>
    %73 = arith.subf %69, %72 : vector<8x8xf32>
    %74 = math.exp %73 : vector<8x8xf32>
    %cst_28 = arith.constant dense<0.000000e+00> : vector<8xf32>
    %75 = vector.multi_reduction <add>, %74, %cst_28 [1] : vector<8x8xf32> to vector<8xf32>
    %76 = vector.shape_cast %75 : vector<8xf32> to vector<8x1xf32>
    %77 = vector.broadcast %76 : vector<8x1xf32> to vector<8x8xf32>
    %78 = arith.divf %74, %77 : vector<8x8xf32>
    %79 = vector.extract_strided_slice %13 {offsets = [0, 24], sizes = [8, 8], strides = [1, 1]} : vector<8x32xf32> to vector<8x8xf32>
    %cst_29 = arith.constant dense<0.000000e+00> : vector<8x8xf32>
    %80 = tpu.matmul %78, %79, %cst_29 {dimension_numbers = #tpu.dot_dimension_numbers<[1], [0], [0], [1], [0, 0, 1, 1], [], []>} : vector<8x8xf32>, vector<8x8xf32>, vector<8x8xf32> -> vector<8x8xf32>
    %c0_30 = arith.constant 0 : index
    %c24 = arith.constant 24 : index
    %81 = vector.load %arg11[%c0_30, %c24] : memref<8x32xf32, #tpu.memory_space<vmem>>, vector<8x8xf32>
    tpu.vector_store %arg11[%c0_30, %c24], %80 {strides = array<i32>} : memref<8x32xf32, #tpu.memory_space<vmem>>, vector<8x8xf32>,
    %c0_31 = arith.constant 0 : index
    %c0_32 = arith.constant 0 : index
    %82 = vector.load %arg11[%c0_31, %c0_32] : memref<8x32xf32, #tpu.memory_space<vmem>>, vector<8x32xf32>
    %c0_33 = arith.constant 0 : index
    %c0_34 = arith.constant 0 : index
    %83 = vector.load %arg5[%c0_33, %c0_34] : memref<32x32xf32, #tpu.memory_space<vmem>>, vector<32x32xf32>
    %cst_35 = arith.constant dense<0.000000e+00> : vector<8x32xf32>
    %84 = tpu.matmul %82, %83, %cst_35 {dimension_numbers = #tpu.dot_dimension_numbers<[1], [0], [0], [1], [0, 0, 1, 1], [], []>} : vector<8x32xf32>, vector<32x32xf32>, vector<8x32xf32> -> vector<8x32xf32>
    %c0_36 = arith.constant 0 : index
    %c0_37 = arith.constant 0 : index
    %85 = vector.load %arg9[%c0_36, %c0_37] : memref<8x32xf32, #tpu.memory_space<vmem>>, vector<1x32xf32>
    %86 = vector.broadcast %85 : vector<1x32xf32> to vector<8x32xf32>
    %87 = arith.addf %84, %86 : vector<8x32xf32>
    %88 = arith.addf %87, %1 : vector<8x32xf32>
    %c1 = arith.constant 1 : index
    %c0_38 = arith.constant 0 : index
    %89 = vector.load %arg9[%c1, %c0_38] : memref<8x32xf32, #tpu.memory_space<vmem>>, vector<1x32xf32>
    %c2 = arith.constant 2 : index
    %c0_39 = arith.constant 0 : index
    %90 = vector.load %arg9[%c2, %c0_39] : memref<8x32xf32, #tpu.memory_space<vmem>>, vector<1x32xf32>
    %cst_40 = arith.constant dense<0.000000e+00> : vector<8xf32>
    %91 = vector.multi_reduction <add>, %88, %cst_40 [1] : vector<8x32xf32> to vector<8xf32>
    %92 = vector.shape_cast %91 : vector<8xf32> to vector<8x1xf32>
    %cst_41 = arith.constant 3.200000e+01 : f32
    %93 = vector.broadcast %cst_41 : f32 to vector<8x1xf32>
    %94 = arith.divf %92, %93 : vector<8x1xf32>
    %95 = vector.broadcast %94 : vector<8x1xf32> to vector<8x32xf32>
    %96 = arith.subf %88, %95 : vector<8x32xf32>
    %97 = arith.mulf %96, %96 : vector<8x32xf32>
    %cst_42 = arith.constant dense<0.000000e+00> : vector<8xf32>
    %98 = vector.multi_reduction <add>, %97, %cst_42 [1] : vector<8x32xf32> to vector<8xf32>
    %99 = vector.shape_cast %98 : vector<8xf32> to vector<8x1xf32>
    %cst_43 = arith.constant 3.200000e+01 : f32
    %100 = vector.broadcast %cst_43 : f32 to vector<8x1xf32>
    %101 = arith.divf %99, %100 : vector<8x1xf32>
    %102 = vector.broadcast %94 : vector<8x1xf32> to vector<8x32xf32>
    %103 = arith.subf %88, %102 : vector<8x32xf32>
    %cst_44 = arith.constant 9.99999974E-6 : f32
    %104 = vector.broadcast %cst_44 : f32 to vector<8x1xf32>
    %105 = arith.addf %101, %104 : vector<8x1xf32>
    %106 = math.rsqrt %105 : vector<8x1xf32>
    %107 = vector.broadcast %106 : vector<8x1xf32> to vector<8x32xf32>
    %108 = arith.mulf %103, %107 : vector<8x32xf32>
    %109 = vector.broadcast %89 : vector<1x32xf32> to vector<8x32xf32>
    %110 = arith.mulf %108, %109 : vector<8x32xf32>
    %111 = vector.broadcast %90 : vector<1x32xf32> to vector<8x32xf32>
    %112 = arith.addf %110, %111 : vector<8x32xf32>
    %c0_45 = arith.constant 0 : index
    %c0_46 = arith.constant 0 : index
    %113 = vector.load %arg6[%c0_45, %c0_46] : memref<32x128xf32, #tpu.memory_space<vmem>>, vector<32x128xf32>
    %cst_47 = arith.constant dense<0.000000e+00> : vector<8x128xf32>
    %114 = tpu.matmul %112, %113, %cst_47 {dimension_numbers = #tpu.dot_dimension_numbers<[1], [0], [0], [1], [0, 0, 1, 1], [], []>} : vector<8x32xf32>, vector<32x128xf32>, vector<8x128xf32> -> vector<8x128xf32>
    %c0_48 = arith.constant 0 : index
    %c0_49 = arith.constant 0 : index
    %115 = vector.load %arg7[%c0_48, %c0_49] : memref<1x128xf32, #tpu.memory_space<vmem>>, vector<1x128xf32>
    %116 = vector.broadcast %115 : vector<1x128xf32> to vector<8x128xf32>
    %117 = arith.addf %114, %116 : vector<8x128xf32>
    %cst_50 = arith.constant 5.000000e-01 : f32
    %118 = vector.broadcast %cst_50 : f32 to vector<8x128xf32>
    %119 = arith.mulf %118, %117 : vector<8x128xf32>
    %cst_51 = arith.constant 4.471500e-02 : f32
    %120 = vector.broadcast %cst_51 : f32 to vector<8x128xf32>
    %121 = arith.mulf %120, %117 : vector<8x128xf32>
    %122 = arith.mulf %121, %117 : vector<8x128xf32>
    %123 = arith.mulf %122, %117 : vector<8x128xf32>
    %124 = arith.addf %117, %123 : vector<8x128xf32>
    %cst_52 = arith.constant 0.797884583 : f32
    %125 = vector.broadcast %cst_52 : f32 to vector<8x128xf32>
    %126 = arith.mulf %125, %124 : vector<8x128xf32>
    %127 = math.tanh %126 : vector<8x128xf32>
    %cst_53 = arith.constant 1.000000e+00 : f32
    %128 = vector.broadcast %cst_53 : f32 to vector<8x128xf32>
    %129 = arith.addf %128, %127 : vector<8x128xf32>
    %130 = arith.mulf %119, %129 : vector<8x128xf32>
    %c0_54 = arith.constant 0 : index
    %c0_55 = arith.constant 0 : index
    %131 = vector.load %arg8[%c0_54, %c0_55] : memref<128x32xf32, #tpu.memory_space<vmem>>, vector<128x32xf32>
    %cst_56 = arith.constant dense<0.000000e+00> : vector<8x32xf32>
    %132 = tpu.matmul %130, %131, %cst_56 {dimension_numbers = #tpu.dot_dimension_numbers<[1], [0], [0], [1], [0, 0, 1, 1], [], []>} : vector<8x128xf32>, vector<128x32xf32>, vector<8x32xf32> -> vector<8x32xf32>
    %c3 = arith.constant 3 : index
    %c0_57 = arith.constant 0 : index
    %133 = vector.load %arg9[%c3, %c0_57] : memref<8x32xf32, #tpu.memory_space<vmem>>, vector<1x32xf32>
    %134 = vector.broadcast %133 : vector<1x32xf32> to vector<8x32xf32>
    %135 = arith.addf %132, %134 : vector<8x32xf32>
    %136 = arith.addf %135, %112 : vector<8x32xf32>
    %c4 = arith.constant 4 : index
    %c0_58 = arith.constant 0 : index
    %137 = vector.load %arg9[%c4, %c0_58] : memref<8x32xf32, #tpu.memory_space<vmem>>, vector<1x32xf32>
    %c5 = arith.constant 5 : index
    %c0_59 = arith.constant 0 : index
    %138 = vector.load %arg9[%c5, %c0_59] : memref<8x32xf32, #tpu.memory_space<vmem>>, vector<1x32xf32>
    %cst_60 = arith.constant dense<0.000000e+00> : vector<8xf32>
    %139 = vector.multi_reduction <add>, %136, %cst_60 [1] : vector<8x32xf32> to vector<8xf32>
    %140 = vector.shape_cast %139 : vector<8xf32> to vector<8x1xf32>
    %cst_61 = arith.constant 3.200000e+01 : f32
    %141 = vector.broadcast %cst_61 : f32 to vector<8x1xf32>
    %142 = arith.divf %140, %141 : vector<8x1xf32>
    %143 = vector.broadcast %142 : vector<8x1xf32> to vector<8x32xf32>
    %144 = arith.subf %136, %143 : vector<8x32xf32>
    %145 = arith.mulf %144, %144 : vector<8x32xf32>
    %cst_62 = arith.constant dense<0.000000e+00> : vector<8xf32>
    %146 = vector.multi_reduction <add>, %145, %cst_62 [1] : vector<8x32xf32> to vector<8xf32>
    %147 = vector.shape_cast %146 : vector<8xf32> to vector<8x1xf32>
    %cst_63 = arith.constant 3.200000e+01 : f32
    %148 = vector.broadcast %cst_63 : f32 to vector<8x1xf32>
    %149 = arith.divf %147, %148 : vector<8x1xf32>
    %150 = vector.broadcast %142 : vector<8x1xf32> to vector<8x32xf32>
    %151 = arith.subf %136, %150 : vector<8x32xf32>
    %cst_64 = arith.constant 9.99999974E-6 : f32
    %152 = vector.broadcast %cst_64 : f32 to vector<8x1xf32>
    %153 = arith.addf %149, %152 : vector<8x1xf32>
    %154 = math.rsqrt %153 : vector<8x1xf32>
    %155 = vector.broadcast %154 : vector<8x1xf32> to vector<8x32xf32>
    %156 = arith.mulf %151, %155 : vector<8x32xf32>
    %157 = vector.broadcast %137 : vector<1x32xf32> to vector<8x32xf32>
    %158 = arith.mulf %156, %157 : vector<8x32xf32>
    %159 = vector.broadcast %138 : vector<1x32xf32> to vector<8x32xf32>
    %160 = arith.addf %158, %159 : vector<8x32xf32>
    %c0_65 = arith.constant 0 : index
    %c0_66 = arith.constant 0 : index
    %c0_67 = arith.constant 0 : index
    %161 = vector.load %arg10[%c0_65, %c0_66, %c0_67] : memref<1x8x32xf32, #tpu.memory_space<vmem>>, vector<1x8x32xf32>
    %162 = vector.shape_cast %161 : vector<1x8x32xf32> to vector<8x32xf32>
    %163 = vector.shape_cast %160 : vector<8x32xf32> to vector<1x8x32xf32>
    tpu.vector_store %arg10[%c0_65, %c0_66, %c0_67], %163 {strides = array<i32>} : memref<1x8x32xf32, #tpu.memory_space<vmem>>, vector<1x8x32xf32>,
    return
  }
  func.func @transform_0(%arg0: i32) -> (i32, i32, i32) {
    %c0_i32 = arith.constant 0 : i32
    %c0_i32_0 = arith.constant 0 : i32
    %c0_i32_1 = arith.constant 0 : i32
    return %arg0, %c0_i32, %c0_i32_0 : i32, i32, i32
  }
  func.func @transform_1(%arg0: i32) -> (i32, i32, i32) {
    %c0_i32 = arith.constant 0 : i32
    %c0_i32_0 = arith.constant 0 : i32
    %c0_i32_1 = arith.constant 0 : i32
    return %arg0, %c0_i32, %c0_i32_0 : i32, i32, i32
  }
  func.func @transform_2(%arg0: i32) -> (i32, i32) {
    %c0_i32 = arith.constant 0 : i32
    %c0_i32_0 = arith.constant 0 : i32
    %c0_i32_1 = arith.constant 0 : i32
    return %c0_i32, %c0_i32_0 : i32, i32
  }
  func.func @transform_3(%arg0: i32) -> (i32, i32) {
    %c0_i32 = arith.constant 0 : i32
    %c0_i32_0 = arith.constant 0 : i32
    %c0_i32_1 = arith.constant 0 : i32
    return %c0_i32, %c0_i32_0 : i32, i32
  }
  func.func @transform_4(%arg0: i32) -> (i32, i32) {
    %c0_i32 = arith.constant 0 : i32
    %c0_i32_0 = arith.constant 0 : i32
    %c0_i32_1 = arith.constant 0 : i32
    return %c0_i32, %c0_i32_0 : i32, i32
  }
  func.func @transform_5(%arg0: i32) -> (i32, i32) {
    %c0_i32 = arith.constant 0 : i32
    %c0_i32_0 = arith.constant 0 : i32
    %c0_i32_1 = arith.constant 0 : i32
    return %c0_i32, %c0_i32_0 : i32, i32
  }
  func.func @transform_6(%arg0: i32) -> (i32, i32) {
    %c0_i32 = arith.constant 0 : i32
    %c0_i32_0 = arith.constant 0 : i32
    %c0_i32_1 = arith.constant 0 : i32
    return %c0_i32, %c0_i32_0 : i32, i32
  }
  func.func @transform_7(%arg0: i32) -> (i32, i32) {
    %c0_i32 = arith.constant 0 : i32
    %c0_i32_0 = arith.constant 0 : i32
    %c0_i32_1 = arith.constant 0 : i32
    return %c0_i32, %c0_i32_0 : i32, i32
  }
  func.func @transform_8(%arg0: i32) -> (i32, i32) {
    %c0_i32 = arith.constant 0 : i32
    %c0_i32_0 = arith.constant 0 : i32
    %c0_i32_1 = arith.constant 0 : i32
    return %c0_i32, %c0_i32_0 : i32, i32
  }
  func.func @transform_9(%arg0: i32) -> (i32, i32, i32) {
    %c0_i32 = arith.constant 0 : i32
    %c0_i32_0 = arith.constant 0 : i32
    %c0_i32_1 = arith.constant 0 : i32
    return %arg0, %c0_i32, %c0_i32_0 : i32, i32, i32
  }
}

module attributes {stable_mosaic.version = 11 : i64} {
  func.func @_bert_layer_kernel(%arg0: i32, %arg1: memref<1x8x32xf32, #tpu.memory_space<vmem>>, %arg2: memref<1x1x8xf32, #tpu.memory_space<vmem>>, %arg3: memref<32x96xf32, #tpu.memory_space<vmem>>, %arg4: memref<1x96xf32, #tpu.memory_space<vmem>>, %arg5: memref<32x32xf32, #tpu.memory_space<vmem>>, %arg6: memref<32x128xf32, #tpu.memory_space<vmem>>, %arg7: memref<1x128xf32, #tpu.memory_space<vmem>>, %arg8: memref<128x32xf32, #tpu.memory_space<vmem>>, %arg9: memref<8x32xf32, #tpu.memory_space<vmem>>, %arg10: memref<1x8x32xf32, #tpu.memory_space<vmem>>, %arg11: memref<8x32xf32, #tpu.memory_space<vmem>>) attributes {dimension_semantics = [#tpu.dimension_semantics<parallel>], iteration_bounds = array<i64: 2>, scalar_prefetch = 0 : i64, scratch_operands = 1 : i64, tpu.core_type = #tpu.core_type<tc>, window_params = [{transform_indices = @transform_0, window_bounds = array<i64: 1, 8, 32>}, {transform_indices = @transform_1, window_bounds = array<i64: 1, 1, 8>}, {pipeline_mode = #tpu.pipeline_mode<synchronous>, transform_indices = @transform_2, window_bounds = array<i64: 32, 96>}, {pipeline_mode = #tpu.pipeline_mode<synchronous>, transform_indices = @transform_3, window_bounds = array<i64: 1, 96>}, {pipeline_mode = #tpu.pipeline_mode<synchronous>, transform_indices = @transform_4, window_bounds = array<i64: 32, 32>}, {pipeline_mode = #tpu.pipeline_mode<synchronous>, transform_indices = @transform_5, window_bounds = array<i64: 32, 128>}, {pipeline_mode = #tpu.pipeline_mode<synchronous>, transform_indices = @transform_6, window_bounds = array<i64: 1, 128>}, {pipeline_mode = #tpu.pipeline_mode<synchronous>, transform_indices = @transform_7, window_bounds = array<i64: 128, 32>}, {pipeline_mode = #tpu.pipeline_mode<synchronous>, transform_indices = @transform_8, window_bounds = array<i64: 8, 32>}, {transform_indices = @transform_9, window_bounds = array<i64: 1, 8, 32>}]} {
    %c0 = arith.constant 0 : index
    %c0_0 = arith.constant 0 : index
    %c0_1 = arith.constant 0 : index
    %0 = vector.load %arg1[%c0, %c0_0, %c0_1] : memref<1x8x32xf32, #tpu.memory_space<vmem>>, vector<1x8x32xf32>
    %1 = vector.shape_cast %0 : vector<1x8x32xf32> to vector<8x32xf32>
    %c0_2 = arith.constant 0 : index
    %c0_3 = arith.constant 0 : index
    %c0_4 = arith.constant 0 : index
    %2 = vector.load %arg2[%c0_2, %c0_3, %c0_4] : memref<1x1x8xf32, #tpu.memory_space<vmem>>, vector<1x1x8xf32>
    %3 = vector.shape_cast %2 : vector<1x1x8xf32> to vector<1x8xf32>
    %c0_5 = arith.constant 0 : index
    %c0_6 = arith.constant 0 : index
    %4 = vector.load %arg3[%c0_5, %c0_6] : memref<32x96xf32, #tpu.memory_space<vmem>>, vector<32x96xf32>
    %cst = arith.constant dense<0.000000e+00> : vector<8x96xf32>
    %5 = tpu.matmul %1, %4, %cst {dimension_numbers = #tpu.dot_dimension_numbers<[1], [0], [0], [1], [0, 0, 1, 1], [], []>} : vector<8x32xf32>, vector<32x96xf32>, vector<8x96xf32> -> vector<8x96xf32>
    %c0_7 = arith.constant 0 : index
    %c0_8 = arith.constant 0 : index
    %6 = vector.load %arg4[%c0_7, %c0_8] : memref<1x96xf32, #tpu.memory_space<vmem>>, vector<1x96xf32>
    %7 = vector.broadcast %6 : vector<1x96xf32> to vector<8x96xf32>
    %8 = arith.addf %5, %7 : vector<8x96xf32>
    %9 = vector.extract_strided_slice %8 {offsets = [0, 0], sizes = [8, 32], strides = [1, 1]} : vector<8x96xf32> to vector<8x32xf32>
    %cst_9 = arith.constant 0.353553385 : f32
    %10 = vector.broadcast %cst_9 : f32 to vector<8x32xf32>
    %11 = arith.mulf %9, %10 : vector<8x32xf32>
    %12 = vector.extract_strided_slice %8 {offsets = [0, 32], sizes = [8, 32], strides = [1, 1]} : vector<8x96xf32> to vector<8x32xf32>
    %13 = vector.extract_strided_slice %8 {offsets = [0, 64], sizes = [8, 32], strides = [1, 1]} : vector<8x96xf32> to vector<8x32xf32>
    %14 = vector.extract_strided_slice %11 {offsets = [0, 0], sizes = [8, 8], strides = [1, 1]} : vector<8x32xf32> to vector<8x8xf32>
    %15 = vector.extract_strided_slice %12 {offsets = [0, 0], sizes = [8, 8], strides = [1, 1]} : vector<8x32xf32> to vector<8x8xf32>
    %cst_10 = arith.constant dense<0.000000e+00> : vector<8x8xf32>
    %16 = tpu.matmul %14, %15, %cst_10 {dimension_numbers = #tpu.dot_dimension_numbers<[1], [1], [0], [0], [0, 0, 1, 0], [], []>} : vector<8x8xf32>, vector<8x8xf32>, vector<8x8xf32> -> vector<8x8xf32>
    %17 = vector.broadcast %3 : vector<1x8xf32> to vector<8x8xf32>
    %18 = arith.addf %16, %17 : vector<8x8xf32>
    %cst_11 = arith.constant dense<0xFF800000> : vector<8xf32>
    %19 = vector.multi_reduction <maximumf>, %18, %cst_11 [1] : vector<8x8xf32> to vector<8xf32>
    %20 = vector.shape_cast %19 : vector<8xf32> to vector<8x1xf32>
    %21 = vector.broadcast %20 : vector<8x1xf32> to vector<8x8xf32>
    %22 = arith.subf %18, %21 : vector<8x8xf32>
    %23 = math.exp %22 : vector<8x8xf32>
    %cst_12 = arith.constant dense<0.000000e+00> : vector<8xf32>
    %24 = vector.multi_reduction <add>, %23, %cst_12 [1] : vector<8x8xf32> to vector<8xf32>
    %25 = vector.shape_cast %24 : vector<8xf32> to vector<8x1xf32>
    %26 = vector.broadcast %25 : vector<8x1xf32> to vector<8x8xf32>
    %27 = arith.divf %23, %26 : vector<8x8xf32>
    %28 = vector.extract_strided_slice %13 {offsets = [0, 0], sizes = [8, 8], strides = [1, 1]} : vector<8x32xf32> to vector<8x8xf32>
    %cst_13 = arith.constant dense<0.000000e+00> : vector<8x8xf32>
    %29 = tpu.matmul %27, %28, %cst_13 {dimension_numbers = #tpu.dot_dimension_numbers<[1], [0], [0], [1], [0, 0, 1, 1], [], []>} : vector<8x8xf32>, vector<8x8xf32>, vector<8x8xf32> -> vector<8x8xf32>
    %c0_14 = arith.constant 0 : index
    %c0_15 = arith.constant 0 : index
    %30 = vector.load %arg11[%c0_14, %c0_15] : memref<8x32xf32, #tpu.memory_space<vmem>>, vector<8x8xf32>
    tpu.vector_store %arg11[%c0_14, %c0_15], %29 {strides = array<i32>} : memref<8x32xf32, #tpu.memory_space<vmem>>, vector<8x8xf32>,
    %31 = vector.extract_strided_slice %11 {offsets = [0, 8], sizes = [8, 8], strides = [1, 1]} : vector<8x32xf32> to vector<8x8xf32>
    %32 = vector.extract_strided_slice %12 {offsets = [0, 8], sizes = [8, 8], strides = [1, 1]} : vector<8x32xf32> to vector<8x8xf32>
    %cst_16 = arith.constant dense<0.000000e+00> : vector<8x8xf32>
    %33 = tpu.matmul %31, %32, %cst_16 {dimension_numbers = #tpu.dot_dimension_numbers<[1], [1], [0], [0], [0, 0, 1, 0], [], []>} : vector<8x8xf32>, vector<8x8xf32>, vector<8x8xf32> -> vector<8x8xf32>
    %34 = vector.broadcast %3 : vector<1x8xf32> to vector<8x8xf32>
    %35 = arith.addf %33, %34 : vector<8x8xf32>
    %cst_17 = arith.constant dense<0xFF800000> : vector<8xf32>
    %36 = vector.multi_reduction <maximumf>, %35, %cst_17 [1] : vector<8x8xf32> to vector<8xf32>
    %37 = vector.shape_cast %36 : vector<8xf32> to vector<8x1xf32>
    %38 = vector.broadcast %37 : vector<8x1xf32> to vector<8x8xf32>
    %39 = arith.subf %35, %38 : vector<8x8xf32>
    %40 = math.exp %39 : vector<8x8xf32>
    %cst_18 = arith.constant dense<0.000000e+00> : vector<8xf32>
    %41 = vector.multi_reduction <add>, %40, %cst_18 [1] : vector<8x8xf32> to vector<8xf32>
    %42 = vector.shape_cast %41 : vector<8xf32> to vector<8x1xf32>
    %43 = vector.broadcast %42 : vector<8x1xf32> to vector<8x8xf32>
    %44 = arith.divf %40, %43 : vector<8x8xf32>
    %45 = vector.extract_strided_slice %13 {offsets = [0, 8], sizes = [8, 8], strides = [1, 1]} : vector<8x32xf32> to vector<8x8xf32>
    %cst_19 = arith.constant dense<0.000000e+00> : vector<8x8xf32>
    %46 = tpu.matmul %44, %45, %cst_19 {dimension_numbers = #tpu.dot_dimension_numbers<[1], [0], [0], [1], [0, 0, 1, 1], [], []>} : vector<8x8xf32>, vector<8x8xf32>, vector<8x8xf32> -> vector<8x8xf32>
    %c0_20 = arith.constant 0 : index
    %c8 = arith.constant 8 : index
    %47 = vector.load %arg11[%c0_20, %c8] : memref<8x32xf32, #tpu.memory_space<vmem>>, vector<8x8xf32>
    tpu.vector_store %arg11[%c0_20, %c8], %46 {strides = array<i32>} : memref<8x32xf32, #tpu.memory_space<vmem>>, vector<8x8xf32>,
    %48 = vector.extract_strided_slice %11 {offsets = [0, 16], sizes = [8, 8], strides = [1, 1]} : vector<8x32xf32> to vector<8x8xf32>
    %49 = vector.extract_strided_slice %12 {offsets = [0, 16], sizes = [8, 8], strides = [1, 1]} : vector<8x32xf32> to vector<8x8xf32>
    %cst_21 = arith.constant dense<0.000000e+00> : vector<8x8xf32>
    %50 = tpu.matmul %48, %49, %cst_21 {dimension_numbers = #tpu.dot_dimension_numbers<[1], [1], [0], [0], [0, 0, 1, 0], [], []>} : vector<8x8xf32>, vector<8x8xf32>, vector<8x8xf32> -> vector<8x8xf32>
    %51 = vector.broadcast %3 : vector<1x8xf32> to vector<8x8xf32>
    %52 = arith.addf %50, %51 : vector<8x8xf32>
    %cst_22 = arith.constant dense<0xFF800000> : vector<8xf32>
    %53 = vector.multi_reduction <maximumf>, %52, %cst_22 [1] : vector<8x8xf32> to vector<8xf32>
    %54 = vector.shape_cast %53 : vector<8xf32> to vector<8x1xf32>
    %55 = vector.broadcast %54 : vector<8x1xf32> to vector<8x8xf32>
    %56 = arith.subf %52, %55 : vector<8x8xf32>
    %57 = math.exp %56 : vector<8x8xf32>
    %cst_23 = arith.constant dense<0.000000e+00> : vector<8xf32>
    %58 = vector.multi_reduction <add>, %57, %cst_23 [1] : vector<8x8xf32> to vector<8xf32>
    %59 = vector.shape_cast %58 : vector<8xf32> to vector<8x1xf32>
    %60 = vector.broadcast %59 : vector<8x1xf32> to vector<8x8xf32>
    %61 = arith.divf %57, %60 : vector<8x8xf32>
    %62 = vector.extract_strided_slice %13 {offsets = [0, 16], sizes = [8, 8], strides = [1, 1]} : vector<8x32xf32> to vector<8x8xf32>
    %cst_24 = arith.constant dense<0.000000e+00> : vector<8x8xf32>
    %63 = tpu.matmul %61, %62, %cst_24 {dimension_numbers = #tpu.dot_dimension_numbers<[1], [0], [0], [1], [0, 0, 1, 1], [], []>} : vector<8x8xf32>, vector<8x8xf32>, vector<8x8xf32> -> vector<8x8xf32>
    %c0_25 = arith.constant 0 : index
    %c16 = arith.constant 16 : index
    %64 = vector.load %arg11[%c0_25, %c16] : memref<8x32xf32, #tpu.memory_space<vmem>>, vector<8x8xf32>
    tpu.vector_store %arg11[%c0_25, %c16], %63 {strides = array<i32>} : memref<8x32xf32, #tpu.memory_space<vmem>>, vector<8x8xf32>,
    %65 = vector.extract_strided_slice %11 {offsets = [0, 24], sizes = [8, 8], strides = [1, 1]} : vector<8x32xf32> to vector<8x8xf32>
    %66 = vector.extract_strided_slice %12 {offsets = [0, 24], sizes = [8, 8], strides = [1, 1]} : vector<8x32xf32> to vector<8x8xf32>
    %cst_26 = arith.constant dense<0.000000e+00> : vector<8x8xf32>
    %67 = tpu.matmul %65, %66, %cst_26 {dimension_numbers = #tpu.dot_dimension_numbers<[1], [1], [0], [0], [0, 0, 1, 0], [], []>} : vector<8x8xf32>, vector<8x8xf32>, vector<8x8xf32> -> vector<8x8xf32>
    %68 = vector.broadcast %3 : vector<1x8xf32> to vector<8x8xf32>
    %69 = arith.addf %67, %68 : vector<8x8xf32>
    %cst_27 = arith.constant dense<0xFF800000> : vector<8xf32>
    %70 = vector.multi_reduction <maximumf>, %69, %cst_27 [1] : vector<8x8xf32> to vector<8xf32>
    %71 = vector.shape_cast %70 : vector<8xf32> to vector<8x1xf32>
    %72 = vector.broadcast %71 : vector<8x1xf32> to vector<8x8xf32>
    %73 = arith.subf %69, %72 : vector<8x8xf32>
    %74 = math.exp %73 : vector<8x8xf32>
    %cst_28 = arith.constant dense<0.000000e+00> : vector<8xf32>
    %75 = vector.multi_reduction <add>, %74, %cst_28 [1] : vector<8x8xf32> to vector<8xf32>
    %76 = vector.shape_cast %75 : vector<8xf32> to vector<8x1xf32>
    %77 = vector.broadcast %76 : vector<8x1xf32> to vector<8x8xf32>
    %78 = arith.divf %74, %77 : vector<8x8xf32>
    %79 = vector.extract_strided_slice %13 {offsets = [0, 24], sizes = [8, 8], strides = [1, 1]} : vector<8x32xf32> to vector<8x8xf32>
    %cst_29 = arith.constant dense<0.000000e+00> : vector<8x8xf32>
    %80 = tpu.matmul %78, %79, %cst_29 {dimension_numbers = #tpu.dot_dimension_numbers<[1], [0], [0], [1], [0, 0, 1, 1], [], []>} : vector<8x8xf32>, vector<8x8xf32>, vector<8x8xf32> -> vector<8x8xf32>
    %c0_30 = arith.constant 0 : index
    %c24 = arith.constant 24 : index
    %81 = vector.load %arg11[%c0_30, %c24] : memref<8x32xf32, #tpu.memory_space<vmem>>, vector<8x8xf32>
    tpu.vector_store %arg11[%c0_30, %c24], %80 {strides = array<i32>} : memref<8x32xf32, #tpu.memory_space<vmem>>, vector<8x8xf32>,
    %c0_31 = arith.constant 0 : index
    %c0_32 = arith.constant 0 : index
    %82 = vector.load %arg11[%c0_31, %c0_32] : memref<8x32xf32, #tpu.memory_space<vmem>>, vector<8x32xf32>
    %c0_33 = arith.constant 0 : index
    %c0_34 = arith.constant 0 : index
    %83 = vector.load %arg5[%c0_33, %c0_34] : memref<32x32xf32, #tpu.memory_space<vmem>>, vector<32x32xf32>
    %cst_35 = arith.constant dense<0.000000e+00> : vector<8x32xf32>
    %84 = tpu.matmul %82, %83, %cst_35 {dimension_numbers = #tpu.dot_dimension_numbers<[1], [0], [0], [1], [0, 0, 1, 1], [], []>} : vector<8x32xf32>, vector<32x32xf32>, vector<8x32xf32> -> vector<8x32xf32>
    %c0_36 = arith.constant 0 : index
    %c0_37 = arith.constant 0 : index
    %85 = vector.load %arg9[%c0_36, %c0_37] : memref<8x32xf32, #tpu.memory_space<vmem>>, vector<1x32xf32>
    %86 = vector.broadcast %85 : vector<1x32xf32> to vector<8x32xf32>
    %87 = arith.addf %84, %86 : vector<8x32xf32>
    %88 = arith.addf %87, %1 : vector<8x32xf32>
    %c1 = arith.constant 1 : index
    %c0_38 = arith.constant 0 : index
    %89 = vector.load %arg9[%c1, %c0_38] : memref<8x32xf32, #tpu.memory_space<vmem>>, vector<1x32xf32>
    %c2 = arith.constant 2 : index
    %c0_39 = arith.constant 0 : index
    %90 = vector.load %arg9[%c2, %c0_39] : memref<8x32xf32, #tpu.memory_space<vmem>>, vector<1x32xf32>
    %cst_40 = arith.constant dense<0.000000e+00> : vector<8xf32>
    %91 = vector.multi_reduction <add>, %88, %cst_40 [1] : vector<8x32xf32> to vector<8xf32>
    %92 = vector.shape_cast %91 : vector<8xf32> to vector<8x1xf32>
    %cst_41 = arith.constant 3.200000e+01 : f32
    %93 = vector.broadcast %cst_41 : f32 to vector<8x1xf32>
    %94 = arith.divf %92, %93 : vector<8x1xf32>
    %95 = vector.broadcast %94 : vector<8x1xf32> to vector<8x32xf32>
    %96 = arith.subf %88, %95 : vector<8x32xf32>
    %97 = arith.mulf %96, %96 : vector<8x32xf32>
    %cst_42 = arith.constant dense<0.000000e+00> : vector<8xf32>
    %98 = vector.multi_reduction <add>, %97, %cst_42 [1] : vector<8x32xf32> to vector<8xf32>
    %99 = vector.shape_cast %98 : vector<8xf32> to vector<8x1xf32>
    %cst_43 = arith.constant 3.200000e+01 : f32
    %100 = vector.broadcast %cst_43 : f32 to vector<8x1xf32>
    %101 = arith.divf %99, %100 : vector<8x1xf32>
    %102 = vector.broadcast %94 : vector<8x1xf32> to vector<8x32xf32>
    %103 = arith.subf %88, %102 : vector<8x32xf32>
    %cst_44 = arith.constant 9.99999974E-6 : f32
    %104 = vector.broadcast %cst_44 : f32 to vector<8x1xf32>
    %105 = arith.addf %101, %104 : vector<8x1xf32>
    %106 = math.rsqrt %105 : vector<8x1xf32>
    %107 = vector.broadcast %106 : vector<8x1xf32> to vector<8x32xf32>
    %108 = arith.mulf %103, %107 : vector<8x32xf32>
    %109 = vector.broadcast %89 : vector<1x32xf32> to vector<8x32xf32>
    %110 = arith.mulf %108, %109 : vector<8x32xf32>
    %111 = vector.broadcast %90 : vector<1x32xf32> to vector<8x32xf32>
    %112 = arith.addf %110, %111 : vector<8x32xf32>
    %c0_45 = arith.constant 0 : index
    %c0_46 = arith.constant 0 : index
    %113 = vector.load %arg6[%c0_45, %c0_46] : memref<32x128xf32, #tpu.memory_space<vmem>>, vector<32x128xf32>
    %cst_47 = arith.constant dense<0.000000e+00> : vector<8x128xf32>
    %114 = tpu.matmul %112, %113, %cst_47 {dimension_numbers = #tpu.dot_dimension_numbers<[1], [0], [0], [1], [0, 0, 1, 1], [], []>} : vector<8x32xf32>, vector<32x128xf32>, vector<8x128xf32> -> vector<8x128xf32>
    %c0_48 = arith.constant 0 : index
    %c0_49 = arith.constant 0 : index
    %115 = vector.load %arg7[%c0_48, %c0_49] : memref<1x128xf32, #tpu.memory_space<vmem>>, vector<1x128xf32>
    %116 = vector.broadcast %115 : vector<1x128xf32> to vector<8x128xf32>
    %117 = arith.addf %114, %116 : vector<8x128xf32>
    %cst_50 = arith.constant 5.000000e-01 : f32
    %118 = vector.broadcast %cst_50 : f32 to vector<8x128xf32>
    %119 = arith.mulf %118, %117 : vector<8x128xf32>
    %cst_51 = arith.constant 4.471500e-02 : f32
    %120 = vector.broadcast %cst_51 : f32 to vector<8x128xf32>
    %121 = arith.mulf %120, %117 : vector<8x128xf32>
    %122 = arith.mulf %121, %117 : vector<8x128xf32>
    %123 = arith.mulf %122, %117 : vector<8x128xf32>
    %124 = arith.addf %117, %123 : vector<8x128xf32>
    %cst_52 = arith.constant 0.797884583 : f32
    %125 = vector.broadcast %cst_52 : f32 to vector<8x128xf32>
    %126 = arith.mulf %125, %124 : vector<8x128xf32>
    %127 = math.tanh %126 : vector<8x128xf32>
    %cst_53 = arith.constant 1.000000e+00 : f32
    %128 = vector.broadcast %cst_53 : f32 to vector<8x128xf32>
    %129 = arith.addf %128, %127 : vector<8x128xf32>
    %130 = arith.mulf %119, %129 : vector<8x128xf32>
    %c0_54 = arith.constant 0 : index
    %c0_55 = arith.constant 0 : index
    %131 = vector.load %arg8[%c0_54, %c0_55] : memref<128x32xf32, #tpu.memory_space<vmem>>, vector<128x32xf32>
    %cst_56 = arith.constant dense<0.000000e+00> : vector<8x32xf32>
    %132 = tpu.matmul %130, %131, %cst_56 {dimension_numbers = #tpu.dot_dimension_numbers<[1], [0], [0], [1], [0, 0, 1, 1], [], []>} : vector<8x128xf32>, vector<128x32xf32>, vector<8x32xf32> -> vector<8x32xf32>
    %c3 = arith.constant 3 : index
    %c0_57 = arith.constant 0 : index
    %133 = vector.load %arg9[%c3, %c0_57] : memref<8x32xf32, #tpu.memory_space<vmem>>, vector<1x32xf32>
    %134 = vector.broadcast %133 : vector<1x32xf32> to vector<8x32xf32>
    %135 = arith.addf %132, %134 : vector<8x32xf32>
    %136 = arith.addf %135, %112 : vector<8x32xf32>
    %c4 = arith.constant 4 : index
    %c0_58 = arith.constant 0 : index
    %137 = vector.load %arg9[%c4, %c0_58] : memref<8x32xf32, #tpu.memory_space<vmem>>, vector<1x32xf32>
    %c5 = arith.constant 5 : index
    %c0_59 = arith.constant 0 : index
    %138 = vector.load %arg9[%c5, %c0_59] : memref<8x32xf32, #tpu.memory_space<vmem>>, vector<1x32xf32>
    %cst_60 = arith.constant dense<0.000000e+00> : vector<8xf32>
    %139 = vector.multi_reduction <add>, %136, %cst_60 [1] : vector<8x32xf32> to vector<8xf32>
    %140 = vector.shape_cast %139 : vector<8xf32> to vector<8x1xf32>
    %cst_61 = arith.constant 3.200000e+01 : f32
    %141 = vector.broadcast %cst_61 : f32 to vector<8x1xf32>
    %142 = arith.divf %140, %141 : vector<8x1xf32>
    %143 = vector.broadcast %142 : vector<8x1xf32> to vector<8x32xf32>
    %144 = arith.subf %136, %143 : vector<8x32xf32>
    %145 = arith.mulf %144, %144 : vector<8x32xf32>
    %cst_62 = arith.constant dense<0.000000e+00> : vector<8xf32>
    %146 = vector.multi_reduction <add>, %145, %cst_62 [1] : vector<8x32xf32> to vector<8xf32>
    %147 = vector.shape_cast %146 : vector<8xf32> to vector<8x1xf32>
    %cst_63 = arith.constant 3.200000e+01 : f32
    %148 = vector.broadcast %cst_63 : f32 to vector<8x1xf32>
    %149 = arith.divf %147, %148 : vector<8x1xf32>
    %150 = vector.broadcast %142 : vector<8x1xf32> to vector<8x32xf32>
    %151 = arith.subf %136, %150 : vector<8x32xf32>
    %cst_64 = arith.constant 9.99999974E-6 : f32
    %152 = vector.broadcast %cst_64 : f32 to vector<8x1xf32>
    %153 = arith.addf %149, %152 : vector<8x1xf32>
    %154 = math.rsqrt %153 : vector<8x1xf32>
    %155 = vector.broadcast %154 : vector<8x1xf32> to vector<8x32xf32>
    %156 = arith.mulf %151, %155 : vector<8x32xf32>
    %157 = vector.broadcast %137 : vector<1x32xf32> to vector<8x32xf32>
    %158 = arith.mulf %156, %157 : vector<8x32xf32>
    %159 = vector.broadcast %138 : vector<1x32xf32> to vector<8x32xf32>
    %160 = arith.addf %158, %159 : vector<8x32xf32>
    %c0_65 = arith.constant 0 : index
    %c0_66 = arith.constant 0 : index
    %c0_67 = arith.constant 0 : index
    %161 = vector.load %arg10[%c0_65, %c0_66, %c0_67] : memref<1x8x32xf32, #tpu.memory_space<vmem>>, vector<1x8x32xf32>
    %162 = vector.shape_cast %161 : vector<1x8x32xf32> to vector<8x32xf32>
    %163 = vector.shape_cast %160 : vector<8x32xf32> to vector<1x8x32xf32>
    tpu.vector_store %arg10[%c0_65, %c0_66, %c0_67], %163 {strides = array<i32>} : memref<1x8x32xf32, #tpu.memory_space<vmem>>, vector<1x8x32xf32>,
    return
  }
  func.func @transform_0(%arg0: i32) -> (i32, i32, i32) {
    %c0_i32 = arith.constant 0 : i32
    %c0_i32_0 = arith.constant 0 : i32
    %c0_i32_1 = arith.constant 0 : i32
    return %arg0, %c0_i32, %c0_i32_0 : i32, i32, i32
  }
  func.func @transform_1(%arg0: i32) -> (i32, i32, i32) {
    %c0_i32 = arith.constant 0 : i32
    %c0_i32_0 = arith.constant 0 : i32
    %c0_i32_1 = arith.constant 0 : i32
    return %arg0, %c0_i32, %c0_i32_0 : i32, i32, i32
  }
  func.func @transform_2(%arg0: i32) -> (i32, i32) {
    %c0_i32 = arith.constant 0 : i32
    %c0_i32_0 = arith.constant 0 : i32
    %c0_i32_1 = arith.constant 0 : i32
    return %c0_i32, %c0_i32_0 : i32, i32
  }
  func.func @transform_3(%arg0: i32) -> (i32, i32) {
    %c0_i32 = arith.constant 0 : i32
    %c0_i32_0 = arith.constant 0 : i32
    %c0_i32_1 = arith.constant 0 : i32
    return %c0_i32, %c0_i32_0 : i32, i32
  }
  func.func @transform_4(%arg0: i32) -> (i32, i32) {
    %c0_i32 = arith.constant 0 : i32
    %c0_i32_0 = arith.constant 0 : i32
    %c0_i32_1 = arith.constant 0 : i32
    return %c0_i32, %c0_i32_0 : i32, i32
  }
  func.func @transform_5(%arg0: i32) -> (i32, i32) {
    %c0_i32 = arith.constant 0 : i32
    %c0_i32_0 = arith.constant 0 : i32
    %c0_i32_1 = arith.constant 0 : i32
    return %c0_i32, %c0_i32_0 : i32, i32
  }
  func.func @transform_6(%arg0: i32) -> (i32, i32) {
    %c0_i32 = arith.constant 0 : i32
    %c0_i32_0 = arith.constant 0 : i32
    %c0_i32_1 = arith.constant 0 : i32
    return %c0_i32, %c0_i32_0 : i32, i32
  }
  func.func @transform_7(%arg0: i32) -> (i32, i32) {
    %c0_i32 = arith.constant 0 : i32
    %c0_i32_0 = arith.constant 0 : i32
    %c0_i32_1 = arith.constant 0 : i32
    return %c0_i32, %c0_i32_0 : i32, i32
  }
  func.func @transform_8(%arg0: i32) -> (i32, i32) {
    %c0_i32 = arith.constant 0 : i32
    %c0_i32_0 = arith.constant 0 : i32
    %c0_i32_1 = arith.constant 0 : i32
    return %c0_i32, %c0_i32_0 : i32, i32
  }
  func.func @transform_9(%arg0: i32) -> (i32, i32, i32) {
    %c0_i32 = arith.constant 0 : i32
    %c0_i32_0 = arith.constant 0 : i32
    %c0_i32_1 = arith.constant 0 : i32
    return %arg0, %c0_i32, %c0_i32_0 : i32, i32, i32
  }
}

</mosaic_0001>

<bundles_post_ra>
// kernel: bert_encoder.3
= control target key start
LH: loop header
LB: loop body
LE: loop exit
PB: predicated region body
PF: predicated region fallthrough
CT: control target
= control target key end

     0   :  { %14 = vsyncpa [#allocation4], 0  ;;  %s1485_s0 = inlined_call_operand.vmem [shape: f32[2,8,32], index: 0, kind: input, shape index: {}]   ;;  %s1486_s1 = inlined_call_operand.vmem [shape: f32[2,1,8], index: 1, kind: input, shape index: {}]   ;;  %s1487_s2 = inlined_call_operand.vmem [shape: f32[32,96], index: 2, kind: input, shape index: {}]   ;;  %s1488_s3 = inlined_call_operand.vmem [shape: f32[1,96], index: 3, kind: input, shape index: {}]   ;;  %s1489_s4 = inlined_call_operand.vmem [shape: f32[32,32], index: 4, kind: input, shape index: {}]   ;;  %s1490_s5 = inlined_call_operand.vmem [shape: f32[32,128], index: 5, kind: input, shape index: {}]   ;;  %s1491_s6 = inlined_call_operand.vmem [shape: f32[1,128], index: 6, kind: input, shape index: {}]   ;;  %s1492_s7 = inlined_call_operand.vmem [shape: f32[128,32], index: 7, kind: input, shape index: {}]   ;;  %s1493_s8 = inlined_call_operand.vmem [shape: f32[8,32], index: 8, kind: input, shape index: {}]   ;;  %s1494_s9 = inlined_call_operand.hbm [shape: f32[2,8,32], index: 9, kind: output, shape index: {}]  }
   0x1   :  { %16 = vsyncpa [#allocation4 + $0x1], 0  ;;  %s1211_s30 = smov 0   ;;  %s1213_s10 = smov 0  }
   0x2   :  { %s1215_s11 = smov 0   ;;  %s1217_s12 = smov 0  }
   0x3 LB: > { %s1232_s13 = sadd.s32 4294967295, %s1144_s12   ;;  %s970_s14 = sadd.s32 4294967294, %s1144_s12   ;;  %s1144_s12 = sphi %s1217_s12, %s1500_s12   ;;  %s1140_s11 = sphi %s1215_s11, %s1499_s11   ;;  %s1136_s10 = sphi %s1213_s10, %s1498_s10   ;;  %s1132_s30 = sphi %s1211_s30, %s1497_s30  }
   0x4   : > { %s1236_s15 = sadd.s32 1, %s1144_s12   ;;  %s228_s16 = sadd.s32 1, %s1140_s11 }
   0x5   : > { %s225_s17 = ssub.s32 %s1144_s12, %s1236_s15  ;;  %p238_p0 = scmp.ne.s32.totalorder %s1140_s11, %s1136_s10 }
   0x6   : > { %p226_p1 = scmp.eq.s32.totalorder %s225_s17, 0  ;;  %p239_p2 = scmp.eq.s32.totalorder %s1232_s13, 1 }
   0x7   : > { %p244_p3 = scmp.ne.s32.totalorder %s1136_s10, %s1132_s30  ;;  %p245_p4 = scmp.eq.s32.totalorder %s970_s14, 1 }
   0x8   : > { %s1247_s18 = scalar_select %p226_p1, %s1140_s11, %s228_s16  }
   0x9   : > { %p1249_p5 = por %p239_p2, %p238_p0  ;;  %p1253_p6 = por %p245_p4, %p244_p3 }
   0xa   : > { %p973_p7 = scmp.ge.s32.totalorder %s1144_s12, 1  ;;  %p297_p8 = scmp.lt.s32.totalorder %s1144_s12, 3 }
   0xc   : > { %p298_p9 = pnand %p973_p7, %p297_p8 }
   0xd   : > { %p335_p10 = scmp.lt.s32.totalorder (!%p298_p9), %s1232_s13, 1  ;;  %s1146_s28 = smov (!%p298_p9), 96  }
   0xe   : > { %301 = sbr.rel (%p298_p9) target bundleno = 1909 (0x775), region = 56  ;;  %s1147_s29 = smov (!%p298_p9), 112  }
   0xf   : > { %s1149_s16 = smov (!%p298_p9), 88   ;;  %s1150_s17 = smov (!%p298_p9), 72  }
  0x10   : > { %s1151_s22 = smov (!%p298_p9), 80   ;;  %s1152_s23 = smov (!%p298_p9), 104  }
  0x11   : > { %s1155_s26 = smov (!%p298_p9), 64  }
  0x13   : > { %v347_v0 = vld [vmem:[%s1487_s2 + $0x18] sm:$0xff]  ;;  %v346_v1 = vld [vmem:[%s1487_s2 + $0x10] sm:$0xff]  ;;  %v345_v2 = vld [vmem:[%s1487_s2 + $0x8] sm:$0xff]  ;;  %s1270_s27 = scalar_select %p335_p10, %s1232_s13, 1  ;;  %vm352_vm0 = vcmask 261120   ;;  %vm383_vm1 = vcmask 64512  }
  0x14   : > { %368 = vmatpush.msra.mxu2 %v347_v0  ;;  %v344_v3 = vld [vmem:[%s1487_s2] sm:$0xff] }
  0x15   : > { %s975_s14 = sshll.u32 %s1270_s27, 3  ;;  %s341_s21 = scalar_lea.vmem %s1486_s1, %s1270_s27  ;;  %v1050_v5 = vld [vmem:[%s1488_s3] ss:$0 sm:$0xff] }
  0x16   : > { %369 = vmatpush.msra.mxu2 %v346_v1  ;;  %s338_s24 = scalar_lea.vmem %s1485_s0, %s975_s14  ;;  %s1148_s14 = smov 120   ;;  %v1049_v16 = vld [vmem:[%s341_s21] ss:$0 sm:$0xff] }
  0x17   : > { %v1283_v4 = vld [vmem:[%s338_s24] sm:$0xff]  ;;  %s1153_s27 = smov 56   ;;  %s1154_s21 = smov 40  }
  0x18   : > { %370 = vmatpush.msra.mxu2 %v345_v2 }
  0x1a   : > { %371 = vmatpush.msra.mxu2 %v344_v3 }
  0x1b   : > { %976 = vmatmul.msk.f32.vlgmr.msra.gmra.mxu2 %vm352_vm0, %v1283_v4 }
  0x9e   : > { %v373_v6 = vpop.f32.mrf.mxu2 }
  0x9f   : > { %v1290_v7 = vadd.f32 %v1050_v5, %v373_v6 }
  0xa1   : > { %381 = vrot.lane.b32.xlu0 %v1290_v7, %s1146_s28  ;;  %v376_v8 = vmul.f32 0.35355338, %v1290_v7  ;;  %s1156_s28 = smov 48  }
  0xa3   : > { %544 = vrot.lane.b32.xlu2 %v376_v8, %s1147_s29  ;;  %460 = vrot.lane.b32.xlu1 %v376_v8, %s1148_s14  ;;  %s1157_s29 = smov 8   ;;  %s1158_s14 = smov 24  }
  0xa9   : > { %462 = vrot.lane.b32.xlu0 %v1290_v7, %s1149_s16  ;;  %s1159_s16 = smov 16  }
  0xab   : > { %630 = vrot.lane.b32.xlu2 %v1290_v7, %s1150_s17  ;;  %546 = vrot.lane.b32.xlu1 %v1290_v7, %s1151_s22  ;;  %s992_s17 = sshll.u32 %s1232_s13, 3 }
  0xb1   : > { %628 = vrot.lane.b32.xlu0 %v376_v8, %s1152_s23 }
  0xfd   : > { %v545_v10 = vpop.permute.xlu2 %544 }
 0x105   : > { %v631_v14 = vpop.permute.xlu2 %630 }
 0x113   : > { %v382_v9 = vpop.permute.xlu0 %381 }
 0x114   : > { %977 = vmatpush.xpose.msk.msra.mxu1 %vm383_vm1, %v382_v9 }
 0x115   : > { %v461_v11 = vpop.permute.xlu1 %460 }
 0x117   : > { %978 = vmatmul.msk.f32.vlgmr.msra.gmra.mxu1 %vm383_vm1, %v376_v8 }
 0x11b   : > { %v463_v12 = vpop.permute.xlu0 %462 }
 0x11c   : > { %980 = vmatpush.xpose.msk.msra.mxu3 %vm383_vm1, %v463_v12 }
 0x11d   : > { %v547_v13 = vpop.permute.xlu1 %546 }
 0x11e   : > { %983 = vmatpush.xpose.msk.msrb.mxu1 %vm383_vm1, %v547_v13 }
 0x11f   : > { %981 = vmatmul.msk.f32.vlgmr.msra.gmra.mxu3 %vm383_vm1, %v461_v11 }
 0x121   : > { %984 = vmatmul.msk.f32.vlgmr.msrb.gmra.mxu1 %vm383_vm1, %v545_v10 }
 0x122   : > { %986 = vmatpush.xpose.msk.msra.mxu1 %vm383_vm1, %v631_v14 }
 0x123   : > { %v629_v15 = vpop.permute.xlu0 %628 }
 0x129   : > { %987 = vmatmul.msk.f32.vlgmr.msra.gmra.mxu1 %vm383_vm1, %v629_v15 }
 0x194   : > { %v406_v17 = vpop.f32.mrf.mxu1 }
 0x195   : > { %v407_v18 = vadd.f32 %v1049_v16, %v406_v17 }
 0x197   : > { %v409_v19 = vsel %vm383_vm1, %v407_v18, -inf }
 0x198   : > { %410 = vmax.xlane.f32.xlu1 %v409_v19 }
 0x19e   : > { %v569_v20 = vpop.f32.mrf.mxu1 }
 0x19f   : > { %v570_v21 = vadd.f32 %v1049_v16, %v569_v20 }
 0x1a1   : > { %v572_v22 = vsel %vm383_vm1, %v570_v21, -inf }
 0x1a2   : > { %v485_v23 = vpop.f32.mrf.mxu3  ;;  %573 = vmax.xlane.f32.xlu0 %v572_v22 }
 0x1a3   : > { %v486_v24 = vadd.f32 %v1049_v16, %v485_v23 }
 0x1a5   : > { %v488_v25 = vsel %vm383_vm1, %v486_v24, -inf }
 0x1a6   : > { %489 = vmax.xlane.f32.xlu2 %v488_v25  ;;  %v653_v26 = vpop.f32.mrf.mxu1 }
 0x1a7   : > { %v654_v27 = vadd.f32 %v1049_v16, %v653_v26 }
 0x1a9   : > { %v656_v28 = vsel %vm383_vm1, %v654_v27, -inf }
 0x1ae   : > { %657 = vmax.xlane.f32.xlu2 %v656_v28 }
 0x1b6   : > { %512 = vrot.lane.b32.xlu0 %v1290_v7, %s1153_s27  ;;  %s897_s27 = scalar_lea.hbm %s1494_s9, %s992_s17 }
 0x20b   : > { %v411_v29 = vpop.xlane.xlu1 %410 }
 0x20c   : > { %v412_v30 = vsub.f32 %v407_v18, %v411_v29 }
 0x20e   : > { %v413_v31 = vmul.f32 1.442695, %v412_v30 }
 0x210   : > { %1058 = vpow2.f32 %v413_v31 }
 0x215   : > { %v574_v32 = vpop.xlane.xlu0 %573 }
 0x216   : > { %v1059_v33 = vpop.eup %1058  ;;  %v575_v34 = vsub.f32 %v570_v21, %v574_v32 }
 0x217   : > { %v415_v35 = vsel %vm383_vm1, %v1059_v33, 0.0 }
 0x218   : > { %v576_v36 = vmul.f32 1.442695, %v575_v34  ;;  %416 = vadd.xlane.f32.xlu1 %v415_v35 }
 0x219   : > { %v490_v37 = vpop.xlane.xlu2 %489 }
 0x21a   : > { %1060 = vpow2.f32 %v576_v36  ;;  %v491_v38 = vsub.f32 %v486_v24, %v490_v37 }
 0x21c   : > { %v492_v39 = vmul.f32 1.442695, %v491_v38 }
 0x21e   : > { %1062 = vpow2.f32 %v492_v39 }
 0x220   : > { %v1316_v40 = vpop.eup %1060 }
 0x221   : > { %v658_v41 = vpop.xlane.xlu2 %657  ;;  %v578_v42 = vsel %vm383_vm1, %v1316_v40, 0.0 }
 0x222   : > { %v659_v43 = vsub.f32 %v654_v27, %v658_v41  ;;  %579 = vadd.xlane.f32.xlu0 %v578_v42 }
 0x224   : > { %v1320_v44 = vpop.eup %1062  ;;  %v660_v45 = vmul.f32 1.442695, %v659_v43 }
 0x225   : > { %v494_v46 = vsel %vm383_vm1, %v1320_v44, 0.0 }
 0x226   : > { %1064 = vpow2.f32 %v660_v45  ;;  %495 = vadd.xlane.f32.xlu2 %v494_v46  ;;  %v714_v45 = vld [vmem:[%s1489_s4 + $0x8] sm:$0xff]  ;;  %v713_v46 = vld [vmem:[%s1489_s4] sm:$0xff] }
 0x228   : > { %v513_v50 = vpop.permute.xlu0 %512 }
 0x22c   : > { %v1324_v47 = vpop.eup %1064 }
 0x22d   : > { %v662_v48 = vsel %vm383_vm1, %v1324_v47, 0.0 }
 0x22e   : > { %663 = vadd.xlane.f32.xlu1 %v662_v48 }
 0x236   : > { %680 = vrot.lane.b32.xlu0 %v1290_v7, %s1154_s21 }
 0x23e   : > { %433 = vrot.lane.b32.xlu2 %v1290_v7, %s1155_s26 }
 0x247   : > { %596 = vrot.lane.b32.xlu1 %v1290_v7, %s1156_s28 }
 0x28b   : > { %v417_v49 = vpop.xlane.xlu1 %416 }
 0x28c   : > { %1066 = vrcp.f32 %v417_v49  ;;  %v429_v56 = vand.u32 2147483648, %v417_v49  ;;  %vm423_vm3 = vweird.f32 %v417_v49  ;;  %v427_v58 = vand.u32 2147483647, %v417_v49 }
 0x28e   : > { %v430_v61 = vor.u32 1.1754944e-38, %v429_v56  ;;  %vm428_vm5 = vcmp.eq.f32.partialorder %v427_v58, 8.507059e+37 }
 0x292   : > { %v1067_v51 = vpop.eup %1066 }
 0x293   : > { %v419_v52 = vmul.f32 %v1067_v51, %v417_v49  ;;  %vm424_vm2 = vweird.f32 %v1067_v51 }
 0x294   : > { %vm425_vm4 = vmor %vm423_vm3, %vm424_vm2 }
 0x295   : > { %v420_v53 = vsub.f32 1.0, %v419_v52  ;;  %v1331_v54 = vpop.xlane.xlu0 %579 }
 0x296   : > { %1068 = vrcp.f32 %v1331_v54  ;;  %v592_v27 = vand.u32 2147483648, %v1331_v54  ;;  %vm586_vm14 = vweird.f32 %v1331_v54  ;;  %v590_v29 = vand.u32 2147483647, %v1331_v54 }
 0x297   : > { %v421_v55 = vmul.f32 %v1067_v51, %v420_v53 }
 0x298   : > { %v593_v34 = vor.u32 1.1754944e-38, %v592_v27  ;;  %vm591_vm3 = vcmp.eq.f32.partialorder %v590_v29, 8.507059e+37  ;;  %v828_v27 = vld [vmem:[%s1492_s7 + $0x50] sm:$0xff]  ;;  %v826_v29 = vld [vmem:[%s1492_s7 + $0x40] sm:$0xff] }
 0x299   : > { %v422_v57 = vadd.f32 %v1067_v51, %v421_v55  ;;  %v496_v59 = vpop.xlane.xlu2 %495  ;;  %v1160_v55 = vmov 32.0  }
 0x29a   : > { %1070 = vrcp.f32 %v496_v59  ;;  %v508_v8 = vand.u32 2147483648, %v496_v59  ;;  %v506_v10 = vand.u32 2147483647, %v496_v59  ;;  %vm502_vm7 = vweird.f32 %v496_v59 }
 0x29b   : > { %v426_v60 = vsel %vm425_vm4, %v1067_v51, %v422_v57  ;;  %vm542_vm4 = vcmask 130112  }
 0x29c   : > { %v431_v62 = vsel %vm428_vm5, %v430_v61, %v426_v60  ;;  %v1069_v63 = vpop.eup %1068  ;;  %v509_v14 = vor.u32 1.1754944e-38, %v508_v8  ;;  %vm507_vm9 = vcmp.eq.f32.partialorder %v506_v10, 8.507059e+37  ;;  %vm710_vm5 = vcmask 261312   ;;  %v832_v8 = vld [vmem:[%s1492_s7 + $0x70] sm:$0xff] }
 0x29d   : > { %v432_v5 = vmul.f32 %v1059_v33, %v431_v62  ;;  %v582_v6 = vmul.f32 %v1069_v63, %v1331_v54  ;;  %vm587_vm11 = vweird.f32 %v1069_v63 }
 0x29e   : > { %vm588_vm2 = vmor %vm586_vm14, %vm587_vm11 }
 0x29f   : > { %v583_v11 = vsub.f32 1.0, %v582_v6  ;;  %v778_v6 = vld [vmem:[%s1490_s5] sm:$0xff] }
 0x2a0   : > { %v1071_v0 = vpop.eup %1070 }
 0x2a1   : > { %v498_v1 = vmul.f32 %v1071_v0, %v496_v59  ;;  %v434_v2 = vpop.permute.xlu2 %433  ;;  %v664_v3 = vpop.xlane.xlu1 %663  ;;  %vm503_vm6 = vweird.f32 %v1071_v0  ;;  %v584_v19 = vmul.f32 %v1069_v63, %v583_v11 }
 0x2a2   : > { %1072 = vrcp.f32 %v664_v3  ;;  %454 = vmatpush.msrb.mxu2 %v434_v2  ;;  %vm504_vm8 = vmor %vm502_vm7, %vm503_vm6  ;;  %v676_v22 = vand.u32 2147483648, %v664_v3  ;;  %v674_v24 = vand.u32 2147483647, %v664_v3  ;;  %vm670_vm12 = vweird.f32 %v664_v3  ;;  %v781_v2 = vld [vmem:[%s1490_s5 + $0x18] sm:$0xff] }
 0x2a3   : > { %v499_v7 = vsub.f32 1.0, %v498_v1  ;;  %979 = vmatmul.msk.f32.vlgmr.msrb.gmra.mxu2 %vm383_vm1, %v432_v5  ;;  %v585_v25 = vadd.f32 %v1069_v63, %v584_v19  ;;  %1074 = vrcp.f32 %v1160_v55  ;;  %v779_v5 = vld [vmem:[%s1490_s5 + $0x8] sm:$0xff] }
 0x2a4   : > { %533 = vmatpush.msra.mxu2 %v513_v50  ;;  %v677_v28 = vor.u32 1.1754944e-38, %v676_v22  ;;  %vm675_vm15 = vcmp.eq.f32.partialorder %v674_v24, 8.507059e+37  ;;  %v1051_v50 = vld [vmem:[%s1493_s8] ss:$0 sm:$0xff] }
 0x2a5   : > { %v500_v9 = vmul.f32 %v1071_v0, %v499_v7  ;;  %v589_v33 = vsel %vm588_vm2, %v1069_v63, %v585_v25  ;;  %v833_v7 = vld [vmem:[%s1492_s7 + $0x78] sm:$0xff] }
 0x2a6   : > { %v594_v35 = vsel %vm591_vm3, %v593_v34, %v589_v33  ;;  %836 = vmatpush.msra.mxu0 %v833_v7  ;;  %v822_v33 = vld [vmem:[%s1492_s7 + $0x20] sm:$0xff]  ;;  %v821_v34 = vld [vmem:[%s1492_s7 + $0x18] sm:$0xff] }
 0x2a7   : > { %v501_v12 = vadd.f32 %v1071_v0, %v500_v9  ;;  %v595_v37 = vmul.f32 %v1316_v40, %v594_v35  ;;  %v716_v40 = vld [vmem:[%s1489_s4 + $0x18] sm:$0xff]  ;;  %v831_v9 = vld [vmem:[%s1492_s7 + $0x68] sm:$0xff]  ;;  %v820_v35 = vld [vmem:[%s1492_s7 + $0x10] sm:$0xff] }
 0x2a8   : > { %v1073_v13 = vpop.eup %1072  ;;  %v681_v15 = vpop.permute.xlu0 %680  ;;  %734 = vmatpush.msrb.mxu1 %v716_v40  ;;  %837 = vmatpush.msra.mxu0 %v832_v8  ;;  %v1057_v8 = vld [vmem:[%s1493_s8 + $0x5] ss:$0 sm:$0xff] }
 0x2a9   : > { %v505_v16 = vsel %vm504_vm8, %v1071_v0, %v501_v12  ;;  %v666_v17 = vmul.f32 %v1073_v13, %v664_v3  ;;  %701 = vmatpush.msrb.mxu2 %v681_v15  ;;  %vm671_vm10 = vweird.f32 %v1073_v13  ;;  %v1075_v56 = vpop.eup %1074  ;;  %v780_v3 = vld [vmem:[%s1490_s5 + $0x10] sm:$0xff]  ;;  %v830_v12 = vld [vmem:[%s1492_s7 + $0x60] sm:$0xff] }
 0x2aa   : > { %v510_v18 = vsel %vm507_vm9, %v509_v14, %v505_v16  ;;  %vm672_vm13 = vmor %vm670_vm12, %vm671_vm10  ;;  %v749_v57 = vmul.f32 32.0, %v1075_v56  ;;  %vm753_vm6 = vweird.f32 %v1075_v56  ;;  %838 = vmatpush.msra.mxu0 %v831_v9 }
 0x2ab   : > { %v667_v20 = vsub.f32 1.0, %v666_v17  ;;  %v511_v21 = vmul.f32 %v1320_v44, %v510_v18  ;;  %v715_v44 = vld [vmem:[%s1489_s4 + $0x10] sm:$0xff] }
 0x2ac   : > { %735 = vmatpush.msrb.mxu1 %v715_v44  ;;  %v750_v58 = vsub.f32 1.0, %v749_v57  ;;  %839 = vmatpush.msra.mxu0 %v830_v12 }
 0x2ad   : > { %v668_v23 = vmul.f32 %v1073_v13, %v667_v20  ;;  %982 = vmatmul.msk.f32.vlgmr.msra.gmra.mxu2 %vm383_vm1, %v511_v21  ;;  %v1052_v20 = vld [vmem:[%s1493_s8 + $0x1] ss:$0 sm:$0xff] }
 0x2ae   : > { %736 = vmatpush.msrb.mxu1 %v714_v45  ;;  %v751_v59 = vmul.f32 %v1075_v56, %v750_v58 }
 0x2af   : > { %v669_v26 = vadd.f32 %v1073_v13, %v668_v23  ;;  %v1053_v23 = vld [vmem:[%s1493_s8 + $0x2] ss:$0 sm:$0xff] }
 0x2b0   : > { %737 = vmatpush.msrb.mxu1 %v713_v46  ;;  %v752_v60 = vadd.f32 %v1075_v56, %v751_v59 }
 0x2b1   : > { %v673_v30 = vsel %vm672_vm13, %v1073_v13, %v669_v26  ;;  %v829_v26 = vld [vmem:[%s1492_s7 + $0x58] sm:$0xff] }
 0x2b2   : > { %v678_v31 = vsel %vm675_vm15, %v677_v28, %v673_v30  ;;  %v1364_v61 = vsel %vm753_vm6, %v1075_v56, %v752_v60  ;;  %840 = vmatpush.msra.mxu0 %v829_v26  ;;  %v827_v28 = vld [vmem:[%s1492_s7 + $0x48] sm:$0xff]  ;;  %v825_v30 = vld [vmem:[%s1492_s7 + $0x38] sm:$0xff] }
 0x2b3   : > { %v679_v32 = vmul.f32 %v1324_v47, %v678_v31  ;;  %v824_v31 = vld [vmem:[%s1492_s7 + $0x30] sm:$0xff] }
 0x2b4   : > { %841 = vmatpush.msra.mxu0 %v828_v27 }
 0x2b5   : > { %988 = vmatmul.msk.f32.vlgmr.msrb.gmra.mxu2 %vm383_vm1, %v679_v32  ;;  %v823_v32 = vld [vmem:[%s1492_s7 + $0x28] sm:$0xff] }
 0x2b6   : > { %842 = vmatpush.msra.mxu0 %v827_v28 }
 0x2b8   : > { %843 = vmatpush.msra.mxu0 %v826_v29 }
 0x2b9   : > { %v597_v36 = vpop.permute.xlu1 %596 }
 0x2ba   : > { %617 = vmatpush.msrb.mxu3 %v597_v36  ;;  %844 = vmatpush.msra.mxu0 %v825_v30  ;;  %v819_v36 = vld [vmem:[%s1492_s7 + $0x8] sm:$0xff] }
 0x2bb   : > { %985 = vmatmul.msk.f32.vlgmr.msrb.gmra.mxu3 %vm383_vm1, %v595_v37  ;;  %v818_v37 = vld [vmem:[%s1492_s7] sm:$0xff] }
 0x2bc   : > { %801 = vmatpush.msra.mxu3 %v781_v2  ;;  %845 = vmatpush.msra.mxu0 %v824_v31 }
 0x2be   : > { %802 = vmatpush.msra.mxu3 %v780_v3  ;;  %846 = vmatpush.msra.mxu0 %v823_v32 }
 0x2c0   : > { %803 = vmatpush.msra.mxu3 %v779_v5  ;;  %847 = vmatpush.msra.mxu0 %v822_v33 }
 0x2c2   : > { %804 = vmatpush.msra.mxu3 %v778_v6  ;;  %848 = vmatpush.msra.mxu0 %v821_v34  ;;  %v1056_v6 = vld [vmem:[%s1493_s8 + $0x4] ss:$0 sm:$0xff] }
 0x2c4   : > { %849 = vmatpush.msra.mxu0 %v820_v35 }
 0x2c6   : > { %850 = vmatpush.msra.mxu0 %v819_v36 }
 0x2c8   : > { %851 = vmatpush.msra.mxu0 %v818_v37 }
 0x326   : > { %v456_v38 = vpop.f32.mrf.mxu2 }
 0x327   : > { %459 = vst.msk [vmem:[#allocation2] sm:$0xff] %vm383_vm1, %v456_v38  ;;  %vm626_vm1 = vcmask 195712   ;;  %v1054_v38 = vld [vmem:[%s1491_s6] ss:$0 sm:$0xff] }
 0x330   : > { %v535_v39 = vpop.f32.mrf.mxu2 }
 0x331   : > { %539 = vrot.lane.b32.xlu2 %v535_v39, %s1157_s29  ;;  %s901_s29 = sshll.u32 %s897_s27, 4  ;;  %s902_s29 = int_to_ptr.hbm [resolvable:$true] %s901_s29 }
 0x332   : > { %s1096_s23 = sshra.s32 %s902_s29, 4  ;;  %s1097_s23 = int_to_ptr.hbm [resolvable:$true] %s1096_s23 }
 0x333   : > { %s1098_s17 = scalar_lea.hbm %s1097_s23, 8  ;;  %p1103_p0 = scmp.lt.s32.totalorder %s1097_s23, %s1494_s9 }
 0x334   : > { %p1099_p11 = scmp.ne.s32.totalorder %s1097_s23, %s1098_s17 }
 0x336   : > { %p1100_p12 = pnand %p1099_p11, %p1249_p5 }
 0x338   : > { %v703_v41 = vpop.f32.mrf.mxu2  ;;  %p1101_p13 = pneg %p1100_p12 }
 0x339   : > { %707 = vrot.lane.b32.xlu0 %v703_v41, %s1158_s14  ;;  %s332_s14 = sand.u32 1, %s1136_s10  }
 0x33a   : > { %s887_s22 = scalar_lea.sflag [#allocation4], %s332_s14 }
 0x33e   : > { %v619_v42 = vpop.f32.mrf.mxu3 }
 0x33f   : > { %623 = vrot.lane.b32.xlu1 %v619_v42, %s1159_s16  ;;  %s974_s16 = sshll.u32 %s332_s14, 3 }
 0x340   : > { %s334_s28 = scalar_lea.vmem [#allocation3], %s974_s16  ;;  %s1102_s16 = scalar_lea.hbm %s1494_s9, 16 }
 0x341   : > { %s899_s13 = sshll.u32 %s334_s28, 4  ;;  %p1104_p1 = scmp.lt.s32.totalorder %s1102_s16, %s1098_s17  ;;  %s900_s13 = int_to_ptr.vmem [resolvable:$true] %s899_s13 }
 0x343   : > { %p1105_p2 = por %p1104_p1, %p1103_p0 }
 0x345   : > { %p1106_p3 = pnand %p1105_p2, %p1101_p13 }
 0x38b   : > { %v540_v43 = vpop.permute.xlu2 %539 }
 0x38c   : > { %543 = vst.msk [vmem:[#allocation2] sm:$0xff] %vm542_vm4, %v540_v43 }
 0x3ab   : > { %v708_v48 = vpop.permute.xlu0 %707 }
 0x3b1   : > { %v624_v47 = vpop.permute.xlu1 %623 }
 0x3b2   : > { %627 = vst.msk [vmem:[#allocation2] sm:$0xff] %vm626_vm1, %v624_v47 }
 0x3b3   : > { %711 = vst.msk [vmem:[#allocation2] sm:$0xff] %vm710_vm5, %v708_v48 }
 0x3ba   : > { %v712_v49 = vld [vmem:[#allocation2] sm:$0xff] }
 0x3bb   : > { %989 = vmatmul.msk.f32.vlgmr.msrb.gmra.mxu1 %vm352_vm0, %v712_v49 }
 0x438   : > { %v739_v51 = vpop.f32.mrf.mxu1 }
 0x439   : > { %v740_v52 = vadd.f32 %v1051_v50, %v739_v51  ;;  %v1055_v50 = vld [vmem:[%s1493_s8 + $0x3] ss:$0 sm:$0xff] }
 0x43b   : > { %v742_v53 = vadd.f32 %v740_v52, %v1283_v4 }
 0x43d   : > { %v745_v54 = vsel %vm352_vm0, %v742_v53, 0.0 }
 0x43e   : > { %746 = vadd.xlane.f32.xlu2 %v745_v54 }
 0x4b1   : > { %v747_v62 = vpop.xlane.xlu2 %746 }
 0x4b2   : > { %v755_v63 = vmul.f32 %v1364_v61, %v747_v62 }
 0x4b4   : > { %v756_v0 = vsub.f32 %v742_v53, %v755_v63 }
 0x4b6   : > { %v757_v1 = vmul.f32 %v756_v0, %v756_v0 }
 0x4b8   : > { %v758_v4 = vsel %vm352_vm0, %v757_v1, 0.0 }
 0x4b9   : > { %759 = vadd.xlane.f32.xlu1 %v758_v4 }
 0x52c   : > { %v760_v10 = vpop.xlane.xlu1 %759 }
 0x52d   : > { %v761_v11 = vmul.f32 %v760_v10, %v1364_v61 }
 0x52f   : > { %v762_v13 = vadd.f32 1e-05, %v761_v11 }
 0x531   : > { %1076 = vrsqrt.f32 %v762_v13  ;;  %vm769_vm8 = vweird.f32 %v762_v13 }
 0x537   : > { %v1077_v14 = vpop.eup %1076 }
 0x538   : > { %v764_v15 = vmul.f32 %v1077_v14, %v762_v13  ;;  %vm770_vm7 = vweird.f32 %v1077_v14 }
 0x539   : > { %vm771_vm9 = vmor %vm769_vm8, %vm770_vm7 }
 0x53a   : > { %v765_v16 = vmul.f32 %v1077_v14, %v764_v15 }
 0x53c   : > { %v766_v17 = vmul.f32 0.5, %v765_v16 }
 0x53e   : > { %v767_v18 = vsub.f32 1.5, %v766_v17 }
 0x540   : > { %v768_v19 = vmul.f32 %v1077_v14, %v767_v18 }
 0x542   : > { %v772_v21 = vsel %vm771_vm9, %v1077_v14, %v768_v19 }
 0x543   : > { %v773_v22 = vmul.f32 %v772_v21, %v756_v0 }
 0x545   : > { %v775_v24 = vmul.f32 %v1052_v20, %v773_v22 }
 0x547   : > { %v777_v25 = vadd.f32 %v1053_v23, %v775_v24 }
 0x549   : > { %990 = vmatmul.msk.f32.vlgmr.msra.gmra.mxu3 %vm352_vm0, %v777_v25 }
 0x5cc   : > { %v806_v39 = vpop.f32.mrf.mxu3 }
 0x5cd   : > { %v807_v41 = vadd.f32 %v1054_v38, %v806_v39 }
 0x5cf   : > { %v810_v42 = vmul.f32 0.044715, %v807_v41  ;;  %v809_v47 = vmul.f32 0.5, %v807_v41 }
 0x5d1   : > { %v811_v43 = vmul.f32 %v810_v42, %v807_v41 }
 0x5d3   : > { %v812_v40 = vmul.f32 %v811_v43, %v807_v41 }
 0x5d5   : > { %v813_v44 = vadd.f32 %v812_v40, %v807_v41 }
 0x5d7   : > { %v814_v45 = vmul.f32 0.7978846, %v813_v44 }
 0x5d9   : > { %1078 = vtanh.f32 %v814_v45 }
 0x5df   : > { %v1079_v46 = vpop.eup %1078 }
 0x5e0   : > { %v816_v48 = vadd.f32 1.0, %v1079_v46 }
 0x5e2   : > { %v817_v49 = vmul.f32 %v816_v48, %v809_v47 }
 0x5e4   : > { %852 = vmatmul.f32.vlgmr.msra.gmra.mxu0 %v817_v49 }
 0x661   : > { %v853_v51 = vpop.f32.mrf.mxu0 }
 0x662   : > { %v854_v52 = vadd.f32 %v1055_v50, %v853_v51 }
 0x664   : > { %v856_v53 = vadd.f32 %v854_v52, %v777_v25 }
 0x666   : > { %v859_v54 = vsel %vm352_vm0, %v856_v53, 0.0 }
 0x667   : > { %860 = vadd.xlane.f32.xlu0 %v859_v54 }
 0x6da   : > { %v861_v55 = vpop.xlane.xlu0 %860 }
 0x6db   : > { %v862_v56 = vmul.f32 %v861_v55, %v1364_v61 }
 0x6dd   : > { %v863_v57 = vsub.f32 %v856_v53, %v862_v56 }
 0x6df   : > { %v864_v58 = vmul.f32 %v863_v57, %v863_v57 }
 0x6e1   : > { %v865_v59 = vsel %vm352_vm0, %v864_v58, 0.0 }
 0x6e2   : > { %866 = vadd.xlane.f32.xlu2 %v865_v59 }
 0x755   : > { %v867_v60 = vpop.xlane.xlu2 %866 }
 0x756   : > { %v868_v62 = vmul.f32 %v867_v60, %v1364_v61 }
 0x758   : > { %v869_v63 = vadd.f32 1e-05, %v868_v62 }
 0x75a   : > { %1080 = vrsqrt.f32 %v869_v63  ;;  %vm876_vm11 = vweird.f32 %v869_v63 }
 0x760   : > { %v1081_v0 = vpop.eup %1080 }
 0x761   : > { %v871_v1 = vmul.f32 %v1081_v0, %v869_v63  ;;  %vm877_vm10 = vweird.f32 %v1081_v0 }
 0x762   : > { %vm878_vm12 = vmor %vm876_vm11, %vm877_vm10 }
 0x763   : > { %v872_v4 = vmul.f32 %v1081_v0, %v871_v1 }
 0x765   : > { %v873_v2 = vmul.f32 0.5, %v872_v4 }
 0x767   : > { %v874_v3 = vsub.f32 1.5, %v873_v2 }
 0x769   : > { %v875_v5 = vmul.f32 %v1081_v0, %v874_v3 }
 0x76b   : > { %v879_v61 = vsel %vm878_vm12, %v1081_v0, %v875_v5 }
 0x76c   : > { %v880_v7 = vmul.f32 %v879_v61, %v863_v57 }
 0x76e   : > { %v882_v9 = vmul.f32 %v1056_v6, %v880_v7 }
 0x770   : > { %v884_v10 = vadd.f32 %v1057_v8, %v882_v9 }
 0x772   : > { %885 = vst.msk [vmem:[%s334_s28] sm:$0xff] %vm352_vm0, %v884_v10 }
 0x773   : > { %1109 = shalt.err (!%p1106_p3)
}
 0x774   : > { %995 = dma.vmem_to_hbm [thread:$0]  (%p1249_p5), %s900_s13, 128, %s902_s29, %s887_s22  }
 0x775 PF: > { %p1001_p4 = scmp.ge.s32.totalorder %s1144_s12, 2  ;;  %s913_s14 = sand.u32 1, %s1132_s30  }
 0x776   : > { %s914_s26 = scalar_lea.sflag [#allocation4], %s913_s14 }
 0x777   : > { %p998_p7 = pnand %p1001_p4, %p1253_p6 }
 0x779   : > { %p999_p8 = pneg %p998_p7 }
 0x77b   : > { %1127 = dma.done.wait (%p999_p8), %s914_s26, 128  }
 0x77c   : > { %1129 = vsyncadd (%p999_p8), %s914_s26, 4294967168  ;;  %p19_p9 = scmp.ge.s32.totalorder %s1236_s15, 4   ;;  %s1497_s30 = smov %s1136_s10 }
 0x77d   : > { %s1498_s10 = smov %s1140_s11  ;;  %s1499_s11 = smov %s1247_s18 }
 0x77e   : > { %s1500_s12 = smov %s1236_s15  ;;  %21 = sbr.rel (!%p19_p9) target bundleno = 3 (0x3), region = 94 }
 0x783   :  { %920 = vsyncpa [#allocation4], 1 }
 0x784   :  { %922 = vsyncpa [#allocation4 + $0x1], 1 }

// kernel: bert_encoder.2
= control target key start
LH: loop header
LB: loop body
LE: loop exit
PB: predicated region body
PF: predicated region fallthrough
CT: control target
= control target key end

     0   :  { %s1101_s30 = smov 0   ;;  %s1311_s0 = inlined_call_operand.vmem [shape: f32[2,8,32], index: 0, kind: input, shape index: {}]   ;;  %s1312_s1 = inlined_call_operand.vmem [shape: f32[2,1,8], index: 1, kind: input, shape index: {}]   ;;  %s1313_s2 = inlined_call_operand.vmem [shape: f32[32,96], index: 2, kind: input, shape index: {}]   ;;  %s1314_s3 = inlined_call_operand.vmem [shape: f32[1,96], index: 3, kind: input, shape index: {}]   ;;  %s1315_s4 = inlined_call_operand.vmem [shape: f32[32,32], index: 4, kind: input, shape index: {}]   ;;  %s1316_s5 = inlined_call_operand.vmem [shape: f32[32,128], index: 5, kind: input, shape index: {}]   ;;  %s1317_s6 = inlined_call_operand.vmem [shape: f32[1,128], index: 6, kind: input, shape index: {}]   ;;  %s1318_s7 = inlined_call_operand.vmem [shape: f32[128,32], index: 7, kind: input, shape index: {}]   ;;  %s1319_s8 = inlined_call_operand.vmem [shape: f32[8,32], index: 8, kind: input, shape index: {}]   ;;  %s1320_s9 = inlined_call_operand.vmem [shape: f32[2,8,32], index: 9, kind: output, shape index: {}]  }
   0x1 LB: > { %s948_s10 = sadd.s32 4294967295, %s1034_s30   ;;  %p952_p0 = scmp.ge.s32.totalorder %s1034_s30, 1  ;;  %s1034_s30 = sphi %s1101_s30, %s19_s30  }
   0x2   : > { %p294_p1 = scmp.lt.s32.totalorder %s1034_s30, 3 }
   0x4   : > { %p295_p2 = pnand %p952_p0, %p294_p1 }
   0x5   : > { %p331_p3 = scmp.lt.s32.totalorder (!%p295_p2), %s948_s10, 1  ;;  %s1036_s28 = smov (!%p295_p2), 96  }
   0x6   : > { %298 = sbr.rel (%p295_p2) target bundleno = 1899 (0x76b), region = 56  ;;  %s1037_s29 = smov (!%p295_p2), 112  }
   0x7   : > { %s1038_s11 = smov (!%p295_p2), 120   ;;  %s1039_s12 = smov (!%p295_p2), 88  }
   0x8   : > { %s1040_s13 = smov (!%p295_p2), 72   ;;  %s1041_s14 = smov (!%p295_p2), 80  }
   0x9   : > { %s1042_s15 = smov (!%p295_p2), 104   ;;  %s1043_s18 = smov (!%p295_p2), 56  }
   0xa   : > { %s1044_s20 = smov (!%p295_p2), 40   ;;  %s1045_s21 = smov (!%p295_p2), 64  }
   0xb   : > { %v347_v0 = vld [vmem:[%s1313_s2 + $0x18] sm:$0xff]  ;;  %v346_v1 = vld [vmem:[%s1313_s2 + $0x10] sm:$0xff]  ;;  %v345_v2 = vld [vmem:[%s1313_s2 + $0x8] sm:$0xff]  ;;  %s1322_s10 = smov (!%p331_p3, %s948_s10), 1  ;;  %vm352_vm0 = vcmask 261120   ;;  %vm383_vm1 = vcmask 64512  }
   0xc   : > { %368 = vmatpush.msra.mxu2 %v347_v0  ;;  %v344_v3 = vld [vmem:[%s1313_s2] sm:$0xff]  ;;  %s953_s19 = sshll.u32 %s1322_s10, 3  ;;  %s337_s22 = scalar_lea.vmem %s1312_s1, %s1322_s10 }
   0xd   : > { %s334_s25 = scalar_lea.vmem %s1311_s0, %s953_s19  ;;  %v996_v5 = vld [vmem:[%s1314_s3] ss:$0 sm:$0xff]  ;;  %s1047_s23 = smov 8  }
   0xe   : > { %369 = vmatpush.msra.mxu2 %v346_v1  ;;  %v1133_v4 = vld [vmem:[%s334_s25] sm:$0xff]  ;;  %s1048_s24 = smov 24   ;;  %s1049_s25 = smov 16  }
   0xf   : > { %v995_v16 = vld [vmem:[%s337_s22] ss:$0 sm:$0xff]  ;;  %s1046_s22 = smov 48   ;;  %s341_s17 = scalar_lea.vmem %s1320_s9, %s953_s19 }
  0x10   : > { %370 = vmatpush.msra.mxu2 %v345_v2 }
  0x12   : > { %371 = vmatpush.msra.mxu2 %v344_v3 }
  0x13   : > { %955 = vmatmul.msk.f32.vlgmr.msra.gmra.mxu2 %vm352_vm0, %v1133_v4 }
  0x96   : > { %v373_v6 = vpop.f32.mrf.mxu2 }
  0x97   : > { %v1140_v7 = vadd.f32 %v996_v5, %v373_v6 }
  0x99   : > { %381 = vrot.lane.b32.xlu0 %v1140_v7, %s1036_s28  ;;  %v376_v8 = vmul.f32 0.35355338, %v1140_v7 }
  0x9b   : > { %544 = vrot.lane.b32.xlu2 %v376_v8, %s1037_s29  ;;  %460 = vrot.lane.b32.xlu1 %v376_v8, %s1038_s11 }
  0xa1   : > { %462 = vrot.lane.b32.xlu0 %v1140_v7, %s1039_s12 }
  0xa3   : > { %630 = vrot.lane.b32.xlu2 %v1140_v7, %s1040_s13  ;;  %546 = vrot.lane.b32.xlu1 %v1140_v7, %s1041_s14 }
  0xa9   : > { %628 = vrot.lane.b32.xlu0 %v376_v8, %s1042_s15 }
  0xf5   : > { %v545_v10 = vpop.permute.xlu2 %544 }
  0xfd   : > { %v631_v14 = vpop.permute.xlu2 %630 }
 0x10b   : > { %v382_v9 = vpop.permute.xlu0 %381 }
 0x10c   : > { %956 = vmatpush.xpose.msk.msra.mxu1 %vm383_vm1, %v382_v9 }
 0x10d   : > { %v461_v11 = vpop.permute.xlu1 %460 }
 0x10f   : > { %957 = vmatmul.msk.f32.vlgmr.msra.gmra.mxu1 %vm383_vm1, %v376_v8 }
 0x113   : > { %v463_v12 = vpop.permute.xlu0 %462 }
 0x114   : > { %959 = vmatpush.xpose.msk.msra.mxu3 %vm383_vm1, %v463_v12 }
 0x115   : > { %v547_v13 = vpop.permute.xlu1 %546 }
 0x116   : > { %962 = vmatpush.xpose.msk.msrb.mxu1 %vm383_vm1, %v547_v13 }
 0x117   : > { %960 = vmatmul.msk.f32.vlgmr.msra.gmra.mxu3 %vm383_vm1, %v461_v11 }
 0x119   : > { %963 = vmatmul.msk.f32.vlgmr.msrb.gmra.mxu1 %vm383_vm1, %v545_v10 }
 0x11a   : > { %965 = vmatpush.xpose.msk.msra.mxu1 %vm383_vm1, %v631_v14 }
 0x11b   : > { %v629_v15 = vpop.permute.xlu0 %628 }
 0x121   : > { %966 = vmatmul.msk.f32.vlgmr.msra.gmra.mxu1 %vm383_vm1, %v629_v15 }
 0x18c   : > { %v406_v17 = vpop.f32.mrf.mxu1 }
 0x18d   : > { %v407_v18 = vadd.f32 %v995_v16, %v406_v17 }
 0x18f   : > { %v409_v19 = vsel %vm383_vm1, %v407_v18, -inf }
 0x190   : > { %410 = vmax.xlane.f32.xlu1 %v409_v19 }
 0x196   : > { %v569_v20 = vpop.f32.mrf.mxu1 }
 0x197   : > { %v570_v21 = vadd.f32 %v995_v16, %v569_v20 }
 0x199   : > { %v572_v22 = vsel %vm383_vm1, %v570_v21, -inf }
 0x19a   : > { %v485_v23 = vpop.f32.mrf.mxu3  ;;  %573 = vmax.xlane.f32.xlu0 %v572_v22 }
 0x19b   : > { %v486_v24 = vadd.f32 %v995_v16, %v485_v23 }
 0x19d   : > { %v488_v25 = vsel %vm383_vm1, %v486_v24, -inf }
 0x19e   : > { %489 = vmax.xlane.f32.xlu2 %v488_v25  ;;  %v653_v26 = vpop.f32.mrf.mxu1 }
 0x19f   : > { %v654_v27 = vadd.f32 %v995_v16, %v653_v26 }
 0x1a1   : > { %v656_v28 = vsel %vm383_vm1, %v654_v27, -inf }
 0x1a6   : > { %657 = vmax.xlane.f32.xlu2 %v656_v28 }
 0x1ae   : > { %512 = vrot.lane.b32.xlu0 %v1140_v7, %s1043_s18 }
 0x203   : > { %v411_v29 = vpop.xlane.xlu1 %410 }
 0x204   : > { %v412_v30 = vsub.f32 %v407_v18, %v411_v29 }
 0x206   : > { %v413_v31 = vmul.f32 1.442695, %v412_v30 }
 0x208   : > { %1004 = vpow2.f32 %v413_v31 }
 0x20d   : > { %v574_v32 = vpop.xlane.xlu0 %573 }
 0x20e   : > { %v1005_v33 = vpop.eup %1004  ;;  %v575_v34 = vsub.f32 %v570_v21, %v574_v32 }
 0x20f   : > { %v415_v35 = vsel %vm383_vm1, %v1005_v33, 0.0 }
 0x210   : > { %v576_v36 = vmul.f32 1.442695, %v575_v34  ;;  %416 = vadd.xlane.f32.xlu1 %v415_v35 }
 0x211   : > { %v490_v37 = vpop.xlane.xlu2 %489 }
 0x212   : > { %1006 = vpow2.f32 %v576_v36  ;;  %v491_v38 = vsub.f32 %v486_v24, %v490_v37 }
 0x214   : > { %v492_v39 = vmul.f32 1.442695, %v491_v38 }
 0x216   : > { %1008 = vpow2.f32 %v492_v39 }
 0x218   : > { %v1166_v40 = vpop.eup %1006 }
 0x219   : > { %v658_v41 = vpop.xlane.xlu2 %657  ;;  %v578_v42 = vsel %vm383_vm1, %v1166_v40, 0.0 }
 0x21a   : > { %v659_v43 = vsub.f32 %v654_v27, %v658_v41  ;;  %579 = vadd.xlane.f32.xlu0 %v578_v42 }
 0x21c   : > { %v1170_v44 = vpop.eup %1008  ;;  %v660_v45 = vmul.f32 1.442695, %v659_v43 }
 0x21d   : > { %v494_v46 = vsel %vm383_vm1, %v1170_v44, 0.0 }
 0x21e   : > { %1010 = vpow2.f32 %v660_v45  ;;  %495 = vadd.xlane.f32.xlu2 %v494_v46  ;;  %v714_v45 = vld [vmem:[%s1315_s4 + $0x8] sm:$0xff]  ;;  %v713_v46 = vld [vmem:[%s1315_s4] sm:$0xff] }
 0x220   : > { %v513_v50 = vpop.permute.xlu0 %512 }
 0x224   : > { %v1174_v47 = vpop.eup %1010 }
 0x225   : > { %v662_v48 = vsel %vm383_vm1, %v1174_v47, 0.0 }
 0x226   : > { %663 = vadd.xlane.f32.xlu1 %v662_v48 }
 0x22e   : > { %680 = vrot.lane.b32.xlu0 %v1140_v7, %s1044_s20 }
 0x236   : > { %433 = vrot.lane.b32.xlu2 %v1140_v7, %s1045_s21 }
 0x23f   : > { %596 = vrot.lane.b32.xlu1 %v1140_v7, %s1046_s22 }
 0x283   : > { %v417_v49 = vpop.xlane.xlu1 %416 }
 0x284   : > { %1012 = vrcp.f32 %v417_v49  ;;  %v429_v56 = vand.u32 2147483648, %v417_v49  ;;  %vm423_vm3 = vweird.f32 %v417_v49  ;;  %v427_v58 = vand.u32 2147483647, %v417_v49 }
 0x286   : > { %v430_v61 = vor.u32 1.1754944e-38, %v429_v56  ;;  %vm428_vm5 = vcmp.eq.f32.partialorder %v427_v58, 8.507059e+37 }
 0x28a   : > { %v1013_v51 = vpop.eup %1012 }
 0x28b   : > { %v419_v52 = vmul.f32 %v1013_v51, %v417_v49  ;;  %vm424_vm2 = vweird.f32 %v1013_v51 }
 0x28c   : > { %vm425_vm4 = vmor %vm423_vm3, %vm424_vm2 }
 0x28d   : > { %v420_v53 = vsub.f32 1.0, %v419_v52  ;;  %v1181_v54 = vpop.xlane.xlu0 %579 }
 0x28e   : > { %1014 = vrcp.f32 %v1181_v54  ;;  %v592_v27 = vand.u32 2147483648, %v1181_v54  ;;  %vm586_vm14 = vweird.f32 %v1181_v54  ;;  %v590_v29 = vand.u32 2147483647, %v1181_v54 }
 0x28f   : > { %v421_v55 = vmul.f32 %v1013_v51, %v420_v53 }
 0x290   : > { %v593_v34 = vor.u32 1.1754944e-38, %v592_v27  ;;  %vm591_vm3 = vcmp.eq.f32.partialorder %v590_v29, 8.507059e+37  ;;  %v828_v27 = vld [vmem:[%s1318_s7 + $0x50] sm:$0xff]  ;;  %v826_v29 = vld [vmem:[%s1318_s7 + $0x40] sm:$0xff] }
 0x291   : > { %v422_v57 = vadd.f32 %v1013_v51, %v421_v55  ;;  %v496_v59 = vpop.xlane.xlu2 %495  ;;  %v1050_v55 = vmov 32.0  }
 0x292   : > { %1016 = vrcp.f32 %v496_v59  ;;  %v508_v8 = vand.u32 2147483648, %v496_v59  ;;  %v506_v10 = vand.u32 2147483647, %v496_v59  ;;  %vm502_vm7 = vweird.f32 %v496_v59 }
 0x293   : > { %v426_v60 = vsel %vm425_vm4, %v1013_v51, %v422_v57  ;;  %vm542_vm4 = vcmask 130112  }
 0x294   : > { %v431_v62 = vsel %vm428_vm5, %v430_v61, %v426_v60  ;;  %v1015_v63 = vpop.eup %1014  ;;  %v509_v14 = vor.u32 1.1754944e-38, %v508_v8  ;;  %vm507_vm9 = vcmp.eq.f32.partialorder %v506_v10, 8.507059e+37  ;;  %vm710_vm5 = vcmask 261312   ;;  %v832_v8 = vld [vmem:[%s1318_s7 + $0x70] sm:$0xff] }
 0x295   : > { %v432_v5 = vmul.f32 %v1005_v33, %v431_v62  ;;  %v582_v6 = vmul.f32 %v1015_v63, %v1181_v54  ;;  %vm587_vm11 = vweird.f32 %v1015_v63 }
 0x296   : > { %vm588_vm2 = vmor %vm586_vm14, %vm587_vm11 }
 0x297   : > { %v583_v11 = vsub.f32 1.0, %v582_v6  ;;  %v778_v6 = vld [vmem:[%s1316_s5] sm:$0xff] }
 0x298   : > { %v1017_v0 = vpop.eup %1016 }
 0x299   : > { %v498_v1 = vmul.f32 %v1017_v0, %v496_v59  ;;  %v434_v2 = vpop.permute.xlu2 %433  ;;  %v664_v3 = vpop.xlane.xlu1 %663  ;;  %vm503_vm6 = vweird.f32 %v1017_v0  ;;  %v584_v19 = vmul.f32 %v1015_v63, %v583_v11 }
 0x29a   : > { %1018 = vrcp.f32 %v664_v3  ;;  %454 = vmatpush.msrb.mxu2 %v434_v2  ;;  %vm504_vm8 = vmor %vm502_vm7, %vm503_vm6  ;;  %v676_v22 = vand.u32 2147483648, %v664_v3  ;;  %v674_v24 = vand.u32 2147483647, %v664_v3  ;;  %vm670_vm12 = vweird.f32 %v664_v3  ;;  %v781_v2 = vld [vmem:[%s1316_s5 + $0x18] sm:$0xff] }
 0x29b   : > { %v499_v7 = vsub.f32 1.0, %v498_v1  ;;  %958 = vmatmul.msk.f32.vlgmr.msrb.gmra.mxu2 %vm383_vm1, %v432_v5  ;;  %v585_v25 = vadd.f32 %v1015_v63, %v584_v19  ;;  %1020 = vrcp.f32 %v1050_v55  ;;  %v779_v5 = vld [vmem:[%s1316_s5 + $0x8] sm:$0xff] }
 0x29c   : > { %533 = vmatpush.msra.mxu2 %v513_v50  ;;  %v677_v28 = vor.u32 1.1754944e-38, %v676_v22  ;;  %vm675_vm15 = vcmp.eq.f32.partialorder %v674_v24, 8.507059e+37  ;;  %v997_v50 = vld [vmem:[%s1319_s8] ss:$0 sm:$0xff] }
 0x29d   : > { %v500_v9 = vmul.f32 %v1017_v0, %v499_v7  ;;  %v589_v33 = vsel %vm588_vm2, %v1015_v63, %v585_v25  ;;  %v833_v7 = vld [vmem:[%s1318_s7 + $0x78] sm:$0xff] }
 0x29e   : > { %v594_v35 = vsel %vm591_vm3, %v593_v34, %v589_v33  ;;  %836 = vmatpush.msra.mxu0 %v833_v7  ;;  %v822_v33 = vld [vmem:[%s1318_s7 + $0x20] sm:$0xff]  ;;  %v821_v34 = vld [vmem:[%s1318_s7 + $0x18] sm:$0xff] }
 0x29f   : > { %v501_v12 = vadd.f32 %v1017_v0, %v500_v9  ;;  %v595_v37 = vmul.f32 %v1166_v40, %v594_v35  ;;  %v716_v40 = vld [vmem:[%s1315_s4 + $0x18] sm:$0xff]  ;;  %v831_v9 = vld [vmem:[%s1318_s7 + $0x68] sm:$0xff]  ;;  %v820_v35 = vld [vmem:[%s1318_s7 + $0x10] sm:$0xff] }
 0x2a0   : > { %v1019_v13 = vpop.eup %1018  ;;  %v681_v15 = vpop.permute.xlu0 %680  ;;  %734 = vmatpush.msrb.mxu1 %v716_v40  ;;  %837 = vmatpush.msra.mxu0 %v832_v8 }
 0x2a1   : > { %v505_v16 = vsel %vm504_vm8, %v1017_v0, %v501_v12  ;;  %v666_v17 = vmul.f32 %v1019_v13, %v664_v3  ;;  %701 = vmatpush.msrb.mxu2 %v681_v15  ;;  %vm671_vm10 = vweird.f32 %v1019_v13  ;;  %v1021_v56 = vpop.eup %1020  ;;  %v780_v3 = vld [vmem:[%s1316_s5 + $0x10] sm:$0xff]  ;;  %v830_v12 = vld [vmem:[%s1318_s7 + $0x60] sm:$0xff] }
 0x2a2   : > { %v510_v18 = vsel %vm507_vm9, %v509_v14, %v505_v16  ;;  %vm672_vm13 = vmor %vm670_vm12, %vm671_vm10  ;;  %v749_v57 = vmul.f32 32.0, %v1021_v56  ;;  %vm753_vm6 = vweird.f32 %v1021_v56  ;;  %838 = vmatpush.msra.mxu0 %v831_v9 }
 0x2a3   : > { %v667_v20 = vsub.f32 1.0, %v666_v17  ;;  %v511_v21 = vmul.f32 %v1170_v44, %v510_v18  ;;  %v715_v44 = vld [vmem:[%s1315_s4 + $0x10] sm:$0xff] }
 0x2a4   : > { %735 = vmatpush.msrb.mxu1 %v715_v44  ;;  %v750_v58 = vsub.f32 1.0, %v749_v57  ;;  %839 = vmatpush.msra.mxu0 %v830_v12 }
 0x2a5   : > { %v668_v23 = vmul.f32 %v1019_v13, %v667_v20  ;;  %961 = vmatmul.msk.f32.vlgmr.msra.gmra.mxu2 %vm383_vm1, %v511_v21  ;;  %v998_v20 = vld [vmem:[%s1319_s8 + $0x1] ss:$0 sm:$0xff] }
 0x2a6   : > { %736 = vmatpush.msrb.mxu1 %v714_v45  ;;  %v751_v59 = vmul.f32 %v1021_v56, %v750_v58 }
 0x2a7   : > { %v669_v26 = vadd.f32 %v1019_v13, %v668_v23  ;;  %v999_v23 = vld [vmem:[%s1319_s8 + $0x2] ss:$0 sm:$0xff] }
 0x2a8   : > { %737 = vmatpush.msrb.mxu1 %v713_v46  ;;  %v752_v60 = vadd.f32 %v1021_v56, %v751_v59 }
 0x2a9   : > { %v673_v30 = vsel %vm672_vm13, %v1019_v13, %v669_v26  ;;  %v829_v26 = vld [vmem:[%s1318_s7 + $0x58] sm:$0xff] }
 0x2aa   : > { %v678_v31 = vsel %vm675_vm15, %v677_v28, %v673_v30  ;;  %v1214_v61 = vsel %vm753_vm6, %v1021_v56, %v752_v60  ;;  %840 = vmatpush.msra.mxu0 %v829_v26  ;;  %v827_v28 = vld [vmem:[%s1318_s7 + $0x48] sm:$0xff]  ;;  %v825_v30 = vld [vmem:[%s1318_s7 + $0x38] sm:$0xff] }
 0x2ab   : > { %v679_v32 = vmul.f32 %v1174_v47, %v678_v31  ;;  %v824_v31 = vld [vmem:[%s1318_s7 + $0x30] sm:$0xff] }
 0x2ac   : > { %841 = vmatpush.msra.mxu0 %v828_v27 }
 0x2ad   : > { %967 = vmatmul.msk.f32.vlgmr.msrb.gmra.mxu2 %vm383_vm1, %v679_v32  ;;  %v823_v32 = vld [vmem:[%s1318_s7 + $0x28] sm:$0xff] }
 0x2ae   : > { %842 = vmatpush.msra.mxu0 %v827_v28 }
 0x2b0   : > { %843 = vmatpush.msra.mxu0 %v826_v29 }
 0x2b1   : > { %v597_v36 = vpop.permute.xlu1 %596 }
 0x2b2   : > { %617 = vmatpush.msrb.mxu3 %v597_v36  ;;  %844 = vmatpush.msra.mxu0 %v825_v30  ;;  %v819_v36 = vld [vmem:[%s1318_s7 + $0x8] sm:$0xff] }
 0x2b3   : > { %964 = vmatmul.msk.f32.vlgmr.msrb.gmra.mxu3 %vm383_vm1, %v595_v37  ;;  %v818_v37 = vld [vmem:[%s1318_s7] sm:$0xff] }
 0x2b4   : > { %801 = vmatpush.msra.mxu3 %v781_v2  ;;  %845 = vmatpush.msra.mxu0 %v824_v31 }
 0x2b6   : > { %802 = vmatpush.msra.mxu3 %v780_v3  ;;  %846 = vmatpush.msra.mxu0 %v823_v32 }
 0x2b8   : > { %803 = vmatpush.msra.mxu3 %v779_v5  ;;  %847 = vmatpush.msra.mxu0 %v822_v33 }
 0x2ba   : > { %804 = vmatpush.msra.mxu3 %v778_v6  ;;  %848 = vmatpush.msra.mxu0 %v821_v34  ;;  %v1002_v6 = vld [vmem:[%s1319_s8 + $0x4] ss:$0 sm:$0xff] }
 0x2bc   : > { %849 = vmatpush.msra.mxu0 %v820_v35 }
 0x2be   : > { %850 = vmatpush.msra.mxu0 %v819_v36 }
 0x2c0   : > { %851 = vmatpush.msra.mxu0 %v818_v37 }
 0x31e   : > { %v456_v38 = vpop.f32.mrf.mxu2 }
 0x31f   : > { %459 = vst.msk [vmem:[#allocation2] sm:$0xff] %vm383_vm1, %v456_v38  ;;  %vm626_vm1 = vcmask 195712   ;;  %v1000_v38 = vld [vmem:[%s1317_s6] ss:$0 sm:$0xff] }
 0x328   : > { %v535_v39 = vpop.f32.mrf.mxu2 }
 0x329   : > { %539 = vrot.lane.b32.xlu2 %v535_v39, %s1047_s23 }
 0x330   : > { %v703_v41 = vpop.f32.mrf.mxu2 }
 0x331   : > { %707 = vrot.lane.b32.xlu0 %v703_v41, %s1048_s24 }
 0x336   : > { %v619_v42 = vpop.f32.mrf.mxu3 }
 0x337   : > { %623 = vrot.lane.b32.xlu1 %v619_v42, %s1049_s25 }
 0x383   : > { %v540_v43 = vpop.permute.xlu2 %539 }
 0x384   : > { %543 = vst.msk [vmem:[#allocation2] sm:$0xff] %vm542_vm4, %v540_v43 }
 0x3a3   : > { %v708_v48 = vpop.permute.xlu0 %707 }
 0x3a9   : > { %v624_v47 = vpop.permute.xlu1 %623 }
 0x3aa   : > { %627 = vst.msk [vmem:[#allocation2] sm:$0xff] %vm626_vm1, %v624_v47 }
 0x3ab   : > { %711 = vst.msk [vmem:[#allocation2] sm:$0xff] %vm710_vm5, %v708_v48 }
 0x3b2   : > { %v712_v49 = vld [vmem:[#allocation2] sm:$0xff] }
 0x3b3   : > { %968 = vmatmul.msk.f32.vlgmr.msrb.gmra.mxu1 %vm352_vm0, %v712_v49 }
 0x430   : > { %v739_v51 = vpop.f32.mrf.mxu1 }
 0x431   : > { %v740_v52 = vadd.f32 %v997_v50, %v739_v51  ;;  %v1001_v50 = vld [vmem:[%s1319_s8 + $0x3] ss:$0 sm:$0xff] }
 0x433   : > { %v742_v53 = vadd.f32 %v740_v52, %v1133_v4 }
 0x435   : > { %v745_v54 = vsel %vm352_vm0, %v742_v53, 0.0 }
 0x436   : > { %746 = vadd.xlane.f32.xlu2 %v745_v54 }
 0x4a9   : > { %v747_v62 = vpop.xlane.xlu2 %746 }
 0x4aa   : > { %v755_v63 = vmul.f32 %v1214_v61, %v747_v62 }
 0x4ac   : > { %v756_v0 = vsub.f32 %v742_v53, %v755_v63 }
 0x4ae   : > { %v757_v1 = vmul.f32 %v756_v0, %v756_v0 }
 0x4b0   : > { %v758_v4 = vsel %vm352_vm0, %v757_v1, 0.0 }
 0x4b1   : > { %759 = vadd.xlane.f32.xlu1 %v758_v4 }
 0x524   : > { %v760_v10 = vpop.xlane.xlu1 %759 }
 0x525   : > { %v761_v11 = vmul.f32 %v760_v10, %v1214_v61 }
 0x527   : > { %v762_v13 = vadd.f32 1e-05, %v761_v11 }
 0x529   : > { %1022 = vrsqrt.f32 %v762_v13  ;;  %vm769_vm8 = vweird.f32 %v762_v13 }
 0x52f   : > { %v1023_v14 = vpop.eup %1022 }
 0x530   : > { %v764_v15 = vmul.f32 %v1023_v14, %v762_v13  ;;  %vm770_vm7 = vweird.f32 %v1023_v14 }
 0x531   : > { %vm771_vm9 = vmor %vm769_vm8, %vm770_vm7 }
 0x532   : > { %v765_v16 = vmul.f32 %v1023_v14, %v764_v15 }
 0x534   : > { %v766_v17 = vmul.f32 0.5, %v765_v16 }
 0x536   : > { %v767_v18 = vsub.f32 1.5, %v766_v17 }
 0x538   : > { %v768_v19 = vmul.f32 %v1023_v14, %v767_v18 }
 0x53a   : > { %v772_v21 = vsel %vm771_vm9, %v1023_v14, %v768_v19 }
 0x53b   : > { %v773_v22 = vmul.f32 %v772_v21, %v756_v0 }
 0x53d   : > { %v775_v24 = vmul.f32 %v998_v20, %v773_v22 }
 0x53f   : > { %v777_v25 = vadd.f32 %v999_v23, %v775_v24 }
 0x541   : > { %969 = vmatmul.msk.f32.vlgmr.msra.gmra.mxu3 %vm352_vm0, %v777_v25 }
 0x5c4   : > { %v806_v39 = vpop.f32.mrf.mxu3 }
 0x5c5   : > { %v807_v41 = vadd.f32 %v1000_v38, %v806_v39 }
 0x5c7   : > { %v810_v42 = vmul.f32 0.044715, %v807_v41  ;;  %v809_v47 = vmul.f32 0.5, %v807_v41 }
 0x5c9   : > { %v811_v43 = vmul.f32 %v810_v42, %v807_v41 }
 0x5cb   : > { %v812_v40 = vmul.f32 %v811_v43, %v807_v41 }
 0x5cd   : > { %v813_v44 = vadd.f32 %v812_v40, %v807_v41 }
 0x5cf   : > { %v814_v45 = vmul.f32 0.7978846, %v813_v44 }
 0x5d1   : > { %1024 = vtanh.f32 %v814_v45 }
 0x5d7   : > { %v1025_v46 = vpop.eup %1024 }
 0x5d8   : > { %v816_v48 = vadd.f32 1.0, %v1025_v46 }
 0x5da   : > { %v817_v49 = vmul.f32 %v816_v48, %v809_v47 }
 0x5dc   : > { %852 = vmatmul.f32.vlgmr.msra.gmra.mxu0 %v817_v49 }
 0x659   : > { %v853_v51 = vpop.f32.mrf.mxu0 }
 0x65a   : > { %v854_v52 = vadd.f32 %v1001_v50, %v853_v51 }
 0x65c   : > { %v856_v53 = vadd.f32 %v854_v52, %v777_v25 }
 0x65e   : > { %v859_v54 = vsel %vm352_vm0, %v856_v53, 0.0 }
 0x65f   : > { %860 = vadd.xlane.f32.xlu0 %v859_v54 }
 0x6d2   : > { %v861_v55 = vpop.xlane.xlu0 %860 }
 0x6d3   : > { %v862_v56 = vmul.f32 %v861_v55, %v1214_v61 }
 0x6d5   : > { %v863_v57 = vsub.f32 %v856_v53, %v862_v56 }
 0x6d7   : > { %v864_v58 = vmul.f32 %v863_v57, %v863_v57 }
 0x6d9   : > { %v865_v59 = vsel %vm352_vm0, %v864_v58, 0.0 }
 0x6da   : > { %866 = vadd.xlane.f32.xlu2 %v865_v59 }
 0x74d   : > { %v867_v60 = vpop.xlane.xlu2 %866 }
 0x74e   : > { %v868_v62 = vmul.f32 %v867_v60, %v1214_v61  ;;  %v1003_v61 = vld [vmem:[%s1319_s8 + $0x5] ss:$0 sm:$0xff] }
 0x750   : > { %v869_v63 = vadd.f32 1e-05, %v868_v62 }
 0x752   : > { %1026 = vrsqrt.f32 %v869_v63  ;;  %vm876_vm11 = vweird.f32 %v869_v63 }
 0x758   : > { %v1027_v0 = vpop.eup %1026 }
 0x759   : > { %v871_v1 = vmul.f32 %v1027_v0, %v869_v63  ;;  %vm877_vm10 = vweird.f32 %v1027_v0 }
 0x75a   : > { %vm878_vm12 = vmor %vm876_vm11, %vm877_vm10 }
 0x75b   : > { %v872_v4 = vmul.f32 %v1027_v0, %v871_v1 }
 0x75d   : > { %v873_v2 = vmul.f32 0.5, %v872_v4 }
 0x75f   : > { %v874_v3 = vsub.f32 1.5, %v873_v2 }
 0x761   : > { %v875_v5 = vmul.f32 %v1027_v0, %v874_v3 }
 0x763   : > { %v879_v7 = vsel %vm878_vm12, %v1027_v0, %v875_v5 }
 0x764   : > { %v880_v8 = vmul.f32 %v879_v7, %v863_v57 }
 0x766   : > { %v882_v9 = vmul.f32 %v1002_v6, %v880_v8 }
 0x768   : > { %v884_v10 = vadd.f32 %v1003_v61, %v882_v9 }
 0x76a   : > { %885 = vst.msk [vmem:[%s341_s17] sm:$0xff] %vm352_vm0, %v884_v10 }
 0x76b PF: > { %s19_s30 = sadd.s32 1, %s1034_s30  }
 0x76c   : > { %p16_p4 = scmp.ge.s32.totalorder %s19_s30, 4  }
 0x76e   :  { %18 = sbr.rel (!%p16_p4) target bundleno = 1 (0x1), region = 89 }

</bundles_post_ra>
